<compile_context>
chip_gen: v7x
topology: tpu7x:2x2x1
jax: 0.10.0
libtpu: 0.0.40
codegen_flags: <defaults>
</compile_context>

<pallas_src>
import functools

import jax
import jax.numpy as jnp
from jax.experimental import pallas as pl
from jax.experimental.pallas import tpu as pltpu


# ------------------------- configuration (small) ----------------------------
N_NODES          = 16    # nodes per graph-batch
IN_CHANNELS      = 8
HIDDEN           = 32
OUT_CHANNELS     = 4
NUM_LAYERS       = 3
NUM_GRAPHS       = 2     # graphs per graph-batch (for mean pooling)
BATCHES_PER_STEP = 16    # 16 x 16 nodes = 256 stacked rows -> fills 256x256 MXU
NUM_STEPS        = 2     # >= 2 grid steps so v7x megacore can split the batch axis
LANE_PAD         = 128   # lane width; all feature dims zero-padded to this


# ------------------------------- kernel -------------------------------------
def theta_gnn_kernel(adj_ref, pool_ref, x_ref, w_ref, b_ref, out_ref,
                     *, num_layers):
    """One macro grid step = BATCHES_PER_STEP graph-batches, block-diag stacked.

    Shapes seen by the kernel (S = BATCHES_PER_STEP*N, GP = BATCHES_PER_STEP*G):
      adj_ref : (S, S) bf16            block-diag sym-normalized A-hat
                (or (1, S, S) if topologies differ per step)
      pool_ref: (GP, S) bf16           block-diag mean-pool matrix (or (1,GP,S))
      x_ref   : (1, S, 128) bf16       node features, zero-padded lanes
      w_ref   : (L+2, 128, 128) bf16   packed weights (grid-invariant)
      b_ref   : (L+2, 1, 128) f32      packed biases  (grid-invariant)
      out_ref : (1, GP, 128) f32       sublane/lane-dense padded output
    """
    f32, bf16 = jnp.float32, jnp.bfloat16

    adj = adj_ref[...]
    if adj.ndim == 3:              # per-step topology variant
        adj = adj[0]
    pool = pool_ref[...]
    if pool.ndim == 3:
        pool = pool[0]

    h = x_ref[0]                                               # (S, 128) bf16

    # GCN layers: h = relu((A-hat @ h) @ W_l + b_l). bf16 MXU, f32 accumulation,
    # bias/ReLU in f32 (v5e VPU has no bf16). Statically unrolled.
    for l in range(num_layers):
        t = jnp.dot(adj, h, preferred_element_type=f32)        # (S, 128)
        h = jnp.dot(t.astype(bf16), w_ref[l],
                    preferred_element_type=f32) + b_ref[l]
        h = jnp.maximum(h, 0.0).astype(bf16)

    # global mean pooling per graph via the block-diag pool matrix.
    pooled = jnp.dot(pool, h, preferred_element_type=f32)      # (GP, 128)

    # MLP head: Linear -> ReLU -> Linear (zero-padded weights, math exact).
    z = jnp.maximum(
        jnp.dot(pooled.astype(bf16), w_ref[num_layers],
                preferred_element_type=f32) + b_ref[num_layers], 0.0)
    out = (jnp.dot(z.astype(bf16), w_ref[num_layers + 1],
                   preferred_element_type=f32) + b_ref[num_layers + 1])
    out_ref[0] = out.astype(out_ref.dtype)       # dense (GP, 128) store


# ----------------------- cacheable preprocessing -----------------------------
def build_adj_pool(edge_index, batch, num_nodes, num_graphs):
    """Scatter-free dense A-hat (sym-normalized, self loops) + mean-pool matrix.

    Computed ONCE per graph topology and cached; not in the Pallas hot path.
    """
    src, dst = edge_index[0], edge_index[1]
    node_ids = jnp.arange(num_nodes)
    src_oh = (src[:, None] == node_ids[None, :]).astype(jnp.float32)   # (E, N)
    dst_oh = (dst[:, None] == node_ids[None, :]).astype(jnp.float32)   # (E, N)
    adj = jnp.minimum(jnp.dot(dst_oh.T, src_oh), 1.0)                  # (N, N)
    adj = jnp.maximum(adj, adj.T)                                      # undirected
    adj = jnp.maximum(adj, jnp.eye(num_nodes, dtype=jnp.float32))      # self loops
    deg = jnp.sum(adj, axis=1)
    dinv = jax.lax.rsqrt(jnp.maximum(deg, 1e-12))
    adj = adj * dinv[:, None] * dinv[None, :]            # D^-1/2 (A+I) D^-1/2

    onehot = (batch[None, :] == jnp.arange(num_graphs)[:, None]).astype(jnp.float32)
    counts = jnp.maximum(jnp.sum(onehot, axis=1, keepdims=True), 1.0)
    pool = onehot / counts                                             # (G, N)
    return adj, pool


def stack_block_diag(mat, count):
    """kron(I_count, mat): block-diagonal stacking of `count` identical blocks."""
    return jnp.kron(jnp.eye(count, dtype=mat.dtype), mat)


def pack_params(params, num_layers, lane_pad=LANE_PAD):
    """Pack all weights/biases into one zero-padded slab each (one-time).

    Invariant: padded regions MUST stay zero (keeps lane padding mathematically
    exact). Weights -> bf16 (MXU operands), biases stay f32 (VPU add).
    """
    L = num_layers
    W = jnp.zeros((L + 2, lane_pad, lane_pad), jnp.float32)
    B = jnp.zeros((L + 2, 1, lane_pad), jnp.float32)
    W = W.at[0, :IN_CHANNELS, :HIDDEN].set(params["w0"])
    B = B.at[0, :, :HIDDEN].set(params["b0"])
    for l in range(L - 1):
        W = W.at[1 + l, :HIDDEN, :HIDDEN].set(params["wl"][l])
        B = B.at[1 + l, :, :HIDDEN].set(params["bl"][l])
    W = W.at[L, :HIDDEN, :HIDDEN // 2].set(params["w1"])
    B = B.at[L, :, :HIDDEN // 2].set(params["b1"])
    W = W.at[L + 1, :HIDDEN // 2, :OUT_CHANNELS].set(params["w2"])
    B = B.at[L + 1, :, :OUT_CHANNELS].set(params["b2"])
    return W.astype(jnp.bfloat16), B


# ------------------------------ wrapper --------------------------------------
def theta_gnn_forward(x_stacked, adj, pool, w_packed, b_packed, *, num_layers):
    """Batched forward over block-diagonally stacked graph-batches.

    x_stacked : (num_steps, S, F)       node features (F <= LANE_PAD)
    adj       : (S, S) shared topology, or (num_steps, S, S) per-step
    pool      : (GP, S) shared, or (num_steps, GP, S) per-step
    returns   : (num_steps, GP, OUT_CHANNELS)
    """
    num_steps, s_rows, f = x_stacked.shape
    gp = pool.shape[-2]
    L = num_layers

    # lane-pad to 128 (exact: padded weight rows / bias lanes are zero), bf16
    x_pad = jnp.pad(x_stacked, ((0, 0), (0, 0), (0, LANE_PAD - f)))
    x_pad = x_pad.astype(jnp.bfloat16)

    if adj.ndim == 2:        # shared topology -> grid-invariant, fetched once
        adj_spec = pl.BlockSpec((s_rows, s_rows), lambda s: (0, 0))
    else:
        adj_spec = pl.BlockSpec((1, s_rows, s_rows), lambda s: (s, 0, 0))
    if pool.ndim == 2:
        pool_spec = pl.BlockSpec((gp, s_rows), lambda s: (0, 0))
    else:
        pool_spec = pl.BlockSpec((1, gp, s_rows), lambda s: (s, 0, 0))

    kernel = functools.partial(theta_gnn_kernel, num_layers=L)

    # NOTE: W/B are grid-invariant; with only 1-2 grid steps the default
    # double-buffering is harmless, so pipeline_mode is left at its default.
    out_pad = pl.pallas_call(
        kernel,
        out_shape=jax.ShapeDtypeStruct((num_steps, gp, LANE_PAD), jnp.float32),
        grid=(num_steps,),
        in_specs=[
            adj_spec,                                                   # A-hat
            pool_spec,                                                  # pool
            pl.BlockSpec((1, s_rows, LANE_PAD), lambda s: (s, 0, 0)),   # x
            pl.BlockSpec((L + 2, LANE_PAD, LANE_PAD),
                         lambda s: (0, 0, 0)),                          # weights
            pl.BlockSpec((L + 2, 1, LANE_PAD), lambda s: (0, 0, 0)),    # biases
        ],
        out_specs=pl.BlockSpec((1, gp, LANE_PAD), lambda s: (s, 0, 0)),
        compiler_params=pltpu.CompilerParams(
            dimension_semantics=("parallel",)),
    )(adj.astype(jnp.bfloat16), pool.astype(jnp.bfloat16), x_pad,
      w_packed, b_packed)

    return out_pad[:, :, :OUT_CHANNELS]


# ------------------------- pure-JAX reference --------------------------------
def reference_forward(x, adj1, pool1, params, num_layers,
                      compute_dtype=jnp.float32):
    """Per-graph-batch reference. compute_dtype=bfloat16 emulates the kernel's
    bf16-operand / f32-accumulation policy; float32 is the full-precision model."""
    f32 = jnp.float32

    def mm(a, b):
        return jnp.dot(a.astype(compute_dtype), b.astype(compute_dtype),
                       preferred_element_type=f32)

    ws = [params["w0"]] + [params["wl"][l] for l in range(num_layers - 1)]
    bs = [params["b0"]] + [params["bl"][l] for l in range(num_layers - 1)]

    def single(xb):
        h = xb
        for w, b in zip(ws, bs):
            h = jnp.maximum(mm(mm(adj1, h), w) + b, 0.0)
        pooled = mm(pool1, h)
        z = jnp.maximum(mm(pooled, params["w1"]) + params["b1"], 0.0)
        return mm(z, params["w2"]) + params["b2"]

    return jax.vmap(single)(x)


# -------------------------- parameter init -----------------------------------
def init_params(key):
    ks = jax.random.split(key, 8)
    scale = 0.1
    return {
        "w0": scale * jax.random.normal(ks[0], (IN_CHANNELS, HIDDEN), jnp.float32),
        "b0": scale * jax.random.normal(ks[1], (1, HIDDEN), jnp.float32),
        "wl": scale * jax.random.normal(ks[2], (NUM_LAYERS - 1, HIDDEN, HIDDEN),
                                        jnp.float32),
        "bl": scale * jax.random.normal(ks[3], (NUM_LAYERS - 1, 1, HIDDEN),
                                        jnp.float32),
        "w1": scale * jax.random.normal(ks[4], (HIDDEN, HIDDEN // 2), jnp.float32),
        "b1": scale * jax.random.normal(ks[5], (1, HIDDEN // 2), jnp.float32),
        "w2": scale * jax.random.normal(ks[6], (HIDDEN // 2, OUT_CHANNELS),
                                        jnp.float32),
        "b2": scale * jax.random.normal(ks[7], (1, OUT_CHANNELS), jnp.float32),
    }


# --------------------------------- main --------------------------------------
if __name__ == "__main__":
    key = jax.random.PRNGKey(0)
    kx, kp = jax.random.split(key, 2)

    total_batches = NUM_STEPS * BATCHES_PER_STEP            # 32 graph-batches
    x = jax.random.normal(kx, (total_batches, N_NODES, IN_CHANNELS), jnp.float32)

    # shared topology: two ring graphs of 8 nodes per graph-batch
    half = N_NODES // NUM_GRAPHS
    src = jnp.arange(N_NODES, dtype=jnp.int32)
    dst = jnp.where((src + 1) % half == 0, src - (half - 1), src + 1).astype(jnp.int32)
    edge_index = jnp.stack([src, dst], axis=0)                          # (2, E)
    batch = jnp.repeat(jnp.arange(NUM_GRAPHS, dtype=jnp.int32), half)   # (N,)

    # A-hat / pool once per topology; block-diag stack to 256 rows per grid step
    adj1, pool1 = build_adj_pool(edge_index, batch, N_NODES, NUM_GRAPHS)
    adj_step = stack_block_diag(adj1, BATCHES_PER_STEP)     # (256, 256)
    pool_step = stack_block_diag(pool1, BATCHES_PER_STEP)   # (32, 256)

    s_rows = BATCHES_PER_STEP * N_NODES
    x_stacked = x.reshape(NUM_STEPS, s_rows, IN_CHANNELS)   # (2, 256, 8)

    params = init_params(kp)
    w_packed, b_packed = pack_params(params, NUM_LAYERS)

    out = theta_gnn_forward(x_stacked, adj_step, pool_step, w_packed, b_packed,
                            num_layers=NUM_LAYERS)
    jax.block_until_ready(out)

    gp = BATCHES_PER_STEP * NUM_GRAPHS
    assert out.shape == (NUM_STEPS, gp, OUT_CHANNELS)
    out_per_batch = out.reshape(total_batches, NUM_GRAPHS, OUT_CHANNELS)
    assert jnp.all(jnp.isfinite(out_per_batch))

    # (1) bf16-emulated reference: same operand rounding / f32-accumulation
    #     policy as the kernel -> validates block-diag stacking, BlockSpecs,
    #     packing and padding tightly.
    ref_bf16 = reference_forward(x, adj1, pool1, params, NUM_LAYERS,
                                 compute_dtype=jnp.bfloat16)
    assert jnp.allclose(out_per_batch, ref_bf16, atol=2e-3, rtol=2e-3), \
        float(jnp.max(jnp.abs(out_per_batch - ref_bf16)))

    # (2) full-precision f32 reference: bounds the bf16-storage error.
    ref_f32 = reference_forward(x, adj1, pool1, params, NUM_LAYERS,
                                compute_dtype=jnp.float32)
    assert jnp.allclose(out_per_batch, ref_f32, atol=5e-2, rtol=5e-2), \
        float(jnp.max(jnp.abs(out_per_batch - ref_f32)))

    print("KERNEL_OK")
</pallas_src>

<mosaic_0001>
module attributes {stable_mosaic.version = 11 : i64} {
  func.func @theta_gnn_kernel(%arg0: i32, %arg1: memref<256x256xbf16, #tpu.memory_space<vmem>>, %arg2: memref<32x256xbf16, #tpu.memory_space<vmem>>, %arg3: memref<1x256x128xbf16, #tpu.memory_space<vmem>>, %arg4: memref<5x128x128xbf16, #tpu.memory_space<vmem>>, %arg5: memref<5x1x128xf32, #tpu.memory_space<vmem>>, %arg6: memref<1x32x128xf32, #tpu.memory_space<vmem>>) attributes {dimension_semantics = [#tpu.dimension_semantics<parallel>], iteration_bounds = array<i64: 2>, scalar_prefetch = 0 : i64, scratch_operands = 0 : i64, tpu.core_type = #tpu.core_type<tc>, window_params = [{pipeline_mode = #tpu.pipeline_mode<synchronous>, transform_indices = @transform_0, window_bounds = array<i64: 256, 256>}, {pipeline_mode = #tpu.pipeline_mode<synchronous>, transform_indices = @transform_1, window_bounds = array<i64: 32, 256>}, {transform_indices = @transform_2, window_bounds = array<i64: 1, 256, 128>}, {pipeline_mode = #tpu.pipeline_mode<synchronous>, transform_indices = @transform_3, window_bounds = array<i64: 5, 128, 128>}, {pipeline_mode = #tpu.pipeline_mode<synchronous>, transform_indices = @transform_4, window_bounds = array<i64: 5, 1, 128>}, {transform_indices = @transform_5, window_bounds = array<i64: 1, 32, 128>}]} {
    %c0 = arith.constant 0 : index
    %c0_0 = arith.constant 0 : index
    %0 = vector.load %arg1[%c0, %c0_0] : memref<256x256xbf16, #tpu.memory_space<vmem>>, vector<256x256xbf16>
    %c0_1 = arith.constant 0 : index
    %c0_2 = arith.constant 0 : index
    %1 = vector.load %arg2[%c0_1, %c0_2] : memref<32x256xbf16, #tpu.memory_space<vmem>>, vector<32x256xbf16>
    %c0_3 = arith.constant 0 : index
    %c0_4 = arith.constant 0 : index
    %c0_5 = arith.constant 0 : index
    %2 = vector.load %arg3[%c0_3, %c0_4, %c0_5] : memref<1x256x128xbf16, #tpu.memory_space<vmem>>, vector<1x256x128xbf16>
    %3 = vector.shape_cast %2 : vector<1x256x128xbf16> to vector<256x128xbf16>
    %cst = arith.constant dense<0.000000e+00> : vector<256x128xf32>
    %4 = tpu.matmul %0, %3, %cst {dimension_numbers = #tpu.dot_dimension_numbers<[1], [0], [0], [1], [0, 0, 1, 1], [], []>} : vector<256x256xbf16>, vector<256x128xbf16>, vector<256x128xf32> -> vector<256x128xf32>
    %5 = arith.truncf %4 : vector<256x128xf32> to vector<256x128xbf16>
    %c0_6 = arith.constant 0 : index
    %c0_7 = arith.constant 0 : index
    %c0_8 = arith.constant 0 : index
    %6 = vector.load %arg4[%c0_6, %c0_7, %c0_8] : memref<5x128x128xbf16, #tpu.memory_space<vmem>>, vector<1x128x128xbf16>
    %7 = vector.shape_cast %6 : vector<1x128x128xbf16> to vector<128x128xbf16>
    %cst_9 = arith.constant dense<0.000000e+00> : vector<256x128xf32>
    %8 = tpu.matmul %5, %7, %cst_9 {dimension_numbers = #tpu.dot_dimension_numbers<[1], [0], [0], [1], [0, 0, 1, 1], [], []>} : vector<256x128xbf16>, vector<128x128xbf16>, vector<256x128xf32> -> vector<256x128xf32>
    %c0_10 = arith.constant 0 : index
    %c0_11 = arith.constant 0 : index
    %c0_12 = arith.constant 0 : index
    %9 = vector.load %arg5[%c0_10, %c0_11, %c0_12] : memref<5x1x128xf32, #tpu.memory_space<vmem>>, vector<1x1x128xf32>
    %10 = vector.shape_cast %9 : vector<1x1x128xf32> to vector<1x128xf32>
    %11 = vector.broadcast %10 : vector<1x128xf32> to vector<256x128xf32>
    %12 = arith.addf %8, %11 : vector<256x128xf32>
    %cst_13 = arith.constant 0.000000e+00 : f32
    %13 = vector.broadcast %cst_13 : f32 to vector<256x128xf32>
    %14 = arith.maximumf %12, %13 : vector<256x128xf32>
    %15 = arith.truncf %14 : vector<256x128xf32> to vector<256x128xbf16>
    %cst_14 = arith.constant dense<0.000000e+00> : vector<256x128xf32>
    %16 = tpu.matmul %0, %15, %cst_14 {dimension_numbers = #tpu.dot_dimension_numbers<[1], [0], [0], [1], [0, 0, 1, 1], [], []>} : vector<256x256xbf16>, vector<256x128xbf16>, vector<256x128xf32> -> vector<256x128xf32>
    %17 = arith.truncf %16 : vector<256x128xf32> to vector<256x128xbf16>
    %c1 = arith.constant 1 : index
    %c0_15 = arith.constant 0 : index
    %c0_16 = arith.constant 0 : index
    %18 = vector.load %arg4[%c1, %c0_15, %c0_16] : memref<5x128x128xbf16, #tpu.memory_space<vmem>>, vector<1x128x128xbf16>
    %19 = vector.shape_cast %18 : vector<1x128x128xbf16> to vector<128x128xbf16>
    %cst_17 = arith.constant dense<0.000000e+00> : vector<256x128xf32>
    %20 = tpu.matmul %17, %19, %cst_17 {dimension_numbers = #tpu.dot_dimension_numbers<[1], [0], [0], [1], [0, 0, 1, 1], [], []>} : vector<256x128xbf16>, vector<128x128xbf16>, vector<256x128xf32> -> vector<256x128xf32>
    %c1_18 = arith.constant 1 : index
    %c0_19 = arith.constant 0 : index
    %c0_20 = arith.constant 0 : index
    %21 = vector.load %arg5[%c1_18, %c0_19, %c0_20] : memref<5x1x128xf32, #tpu.memory_space<vmem>>, vector<1x1x128xf32>
    %22 = vector.shape_cast %21 : vector<1x1x128xf32> to vector<1x128xf32>
    %23 = vector.broadcast %22 : vector<1x128xf32> to vector<256x128xf32>
    %24 = arith.addf %20, %23 : vector<256x128xf32>
    %cst_21 = arith.constant 0.000000e+00 : f32
    %25 = vector.broadcast %cst_21 : f32 to vector<256x128xf32>
    %26 = arith.maximumf %24, %25 : vector<256x128xf32>
    %27 = arith.truncf %26 : vector<256x128xf32> to vector<256x128xbf16>
    %cst_22 = arith.constant dense<0.000000e+00> : vector<256x128xf32>
    %28 = tpu.matmul %0, %27, %cst_22 {dimension_numbers = #tpu.dot_dimension_numbers<[1], [0], [0], [1], [0, 0, 1, 1], [], []>} : vector<256x256xbf16>, vector<256x128xbf16>, vector<256x128xf32> -> vector<256x128xf32>
    %29 = arith.truncf %28 : vector<256x128xf32> to vector<256x128xbf16>
    %c2 = arith.constant 2 : index
    %c0_23 = arith.constant 0 : index
    %c0_24 = arith.constant 0 : index
    %30 = vector.load %arg4[%c2, %c0_23, %c0_24] : memref<5x128x128xbf16, #tpu.memory_space<vmem>>, vector<1x128x128xbf16>
    %31 = vector.shape_cast %30 : vector<1x128x128xbf16> to vector<128x128xbf16>
    %cst_25 = arith.constant dense<0.000000e+00> : vector<256x128xf32>
    %32 = tpu.matmul %29, %31, %cst_25 {dimension_numbers = #tpu.dot_dimension_numbers<[1], [0], [0], [1], [0, 0, 1, 1], [], []>} : vector<256x128xbf16>, vector<128x128xbf16>, vector<256x128xf32> -> vector<256x128xf32>
    %c2_26 = arith.constant 2 : index
    %c0_27 = arith.constant 0 : index
    %c0_28 = arith.constant 0 : index
    %33 = vector.load %arg5[%c2_26, %c0_27, %c0_28] : memref<5x1x128xf32, #tpu.memory_space<vmem>>, vector<1x1x128xf32>
    %34 = vector.shape_cast %33 : vector<1x1x128xf32> to vector<1x128xf32>
    %35 = vector.broadcast %34 : vector<1x128xf32> to vector<256x128xf32>
    %36 = arith.addf %32, %35 : vector<256x128xf32>
    %cst_29 = arith.constant 0.000000e+00 : f32
    %37 = vector.broadcast %cst_29 : f32 to vector<256x128xf32>
    %38 = arith.maximumf %36, %37 : vector<256x128xf32>
    %39 = arith.truncf %38 : vector<256x128xf32> to vector<256x128xbf16>
    %cst_30 = arith.constant dense<0.000000e+00> : vector<32x128xf32>
    %40 = tpu.matmul %1, %39, %cst_30 {dimension_numbers = #tpu.dot_dimension_numbers<[1], [0], [0], [1], [0, 0, 1, 1], [], []>} : vector<32x256xbf16>, vector<256x128xbf16>, vector<32x128xf32> -> vector<32x128xf32>
    %41 = arith.truncf %40 : vector<32x128xf32> to vector<32x128xbf16>
    %c3 = arith.constant 3 : index
    %c0_31 = arith.constant 0 : index
    %c0_32 = arith.constant 0 : index
    %42 = vector.load %arg4[%c3, %c0_31, %c0_32] : memref<5x128x128xbf16, #tpu.memory_space<vmem>>, vector<1x128x128xbf16>
    %43 = vector.shape_cast %42 : vector<1x128x128xbf16> to vector<128x128xbf16>
    %cst_33 = arith.constant dense<0.000000e+00> : vector<32x128xf32>
    %44 = tpu.matmul %41, %43, %cst_33 {dimension_numbers = #tpu.dot_dimension_numbers<[1], [0], [0], [1], [0, 0, 1, 1], [], []>} : vector<32x128xbf16>, vector<128x128xbf16>, vector<32x128xf32> -> vector<32x128xf32>
    %c3_34 = arith.constant 3 : index
    %c0_35 = arith.constant 0 : index
    %c0_36 = arith.constant 0 : index
    %45 = vector.load %arg5[%c3_34, %c0_35, %c0_36] : memref<5x1x128xf32, #tpu.memory_space<vmem>>, vector<1x1x128xf32>
    %46 = vector.shape_cast %45 : vector<1x1x128xf32> to vector<1x128xf32>
    %47 = vector.broadcast %46 : vector<1x128xf32> to vector<32x128xf32>
    %48 = arith.addf %44, %47 : vector<32x128xf32>
    %cst_37 = arith.constant 0.000000e+00 : f32
    %49 = vector.broadcast %cst_37 : f32 to vector<32x128xf32>
    %50 = arith.maximumf %48, %49 : vector<32x128xf32>
    %51 = arith.truncf %50 : vector<32x128xf32> to vector<32x128xbf16>
    %c4 = arith.constant 4 : index
    %c0_38 = arith.constant 0 : index
    %c0_39 = arith.constant 0 : index
    %52 = vector.load %arg4[%c4, %c0_38, %c0_39] : memref<5x128x128xbf16, #tpu.memory_space<vmem>>, vector<1x128x128xbf16>
    %53 = vector.shape_cast %52 : vector<1x128x128xbf16> to vector<128x128xbf16>
    %cst_40 = arith.constant dense<0.000000e+00> : vector<32x128xf32>
    %54 = tpu.matmul %51, %53, %cst_40 {dimension_numbers = #tpu.dot_dimension_numbers<[1], [0], [0], [1], [0, 0, 1, 1], [], []>} : vector<32x128xbf16>, vector<128x128xbf16>, vector<32x128xf32> -> vector<32x128xf32>
    %c4_41 = arith.constant 4 : index
    %c0_42 = arith.constant 0 : index
    %c0_43 = arith.constant 0 : index
    %55 = vector.load %arg5[%c4_41, %c0_42, %c0_43] : memref<5x1x128xf32, #tpu.memory_space<vmem>>, vector<1x1x128xf32>
    %56 = vector.shape_cast %55 : vector<1x1x128xf32> to vector<1x128xf32>
    %57 = vector.broadcast %56 : vector<1x128xf32> to vector<32x128xf32>
    %58 = arith.addf %54, %57 : vector<32x128xf32>
    %c0_44 = arith.constant 0 : index
    %c0_45 = arith.constant 0 : index
    %c0_46 = arith.constant 0 : index
    %59 = vector.load %arg6[%c0_44, %c0_45, %c0_46] : memref<1x32x128xf32, #tpu.memory_space<vmem>>, vector<1x32x128xf32>
    %60 = vector.shape_cast %59 : vector<1x32x128xf32> to vector<32x128xf32>
    %61 = vector.shape_cast %58 : vector<32x128xf32> to vector<1x32x128xf32>
    tpu.vector_store %arg6[%c0_44, %c0_45, %c0_46], %61 {strides = array<i32>} : memref<1x32x128xf32, #tpu.memory_space<vmem>>, vector<1x32x128xf32>,
    return
  }
  func.func @transform_0(%arg0: i32) -> (i32, i32) {
    %c0_i32 = arith.constant 0 : i32
    %c0_i32_0 = arith.constant 0 : i32
    %c0_i32_1 = arith.constant 0 : i32
    return %c0_i32, %c0_i32_0 : i32, i32
  }
  func.func @transform_1(%arg0: i32) -> (i32, i32) {
    %c0_i32 = arith.constant 0 : i32
    %c0_i32_0 = arith.constant 0 : i32
    %c0_i32_1 = arith.constant 0 : i32
    return %c0_i32, %c0_i32_0 : i32, i32
  }
  func.func @transform_2(%arg0: i32) -> (i32, i32, i32) {
    %c0_i32 = arith.constant 0 : i32
    %c0_i32_0 = arith.constant 0 : i32
    %c0_i32_1 = arith.constant 0 : i32
    return %arg0, %c0_i32, %c0_i32_0 : i32, i32, i32
  }
  func.func @transform_3(%arg0: i32) -> (i32, i32, i32) {
    %c0_i32 = arith.constant 0 : i32
    %c0_i32_0 = arith.constant 0 : i32
    %c0_i32_1 = arith.constant 0 : i32
    %c0_i32_2 = arith.constant 0 : i32
    return %c0_i32, %c0_i32_0, %c0_i32_1 : i32, i32, i32
  }
  func.func @transform_4(%arg0: i32) -> (i32, i32, i32) {
    %c0_i32 = arith.constant 0 : i32
    %c0_i32_0 = arith.constant 0 : i32
    %c0_i32_1 = arith.constant 0 : i32
    %c0_i32_2 = arith.constant 0 : i32
    return %c0_i32, %c0_i32_0, %c0_i32_1 : i32, i32, i32
  }
  func.func @transform_5(%arg0: i32) -> (i32, i32, i32) {
    %c0_i32 = arith.constant 0 : i32
    %c0_i32_0 = arith.constant 0 : i32
    %c0_i32_1 = arith.constant 0 : i32
    return %arg0, %c0_i32, %c0_i32_0 : i32, i32, i32
  }
}

</mosaic_0001>

<bundles_post_ra>
// kernel: tpu_custom_call.1
= control target key start
LH: loop header
LB: loop body
LE: loop exit
PB: predicated region body
PF: predicated region fallthrough
CT: control target
= control target key end

     0   :  { %s4215_s0 = inlined_call_operand.hbm [shape: bf16[256,256], index: 0, kind: input, shape index: {}]   ;;  %s4216_s1 = inlined_call_operand.hbm [shape: bf16[32,256], index: 1, kind: input, shape index: {}]   ;;  %s4217_s2 = inlined_call_operand.hbm [shape: bf16[2,256,128], index: 2, kind: input, shape index: {}]   ;;  %s4218_s3 = inlined_call_operand.hbm [shape: bf16[5,128,128], index: 3, kind: input, shape index: {}]   ;;  %s4219_s4 = inlined_call_operand.vmem [shape: f32[5,1,128], index: 4, kind: input, shape index: {}]   ;;  %s4220_s5 = inlined_call_operand.hbm [shape: f32[2,32,128], index: 5, kind: output, shape index: {}]  }
   0x1   :  { %4228 = sst [smem:[#allocation17_spill]] %s4215_s0 }
   0x2   :  { %10 = vsyncpa [#allocation3], 0 }
   0x3   :  { %11 = vsyncpa [#allocation6], 0 }
   0x4   :  { %12 = vsyncpa [#allocation4], 0 }
   0x5   :  { %14 = vsyncpa [#allocation4 + $0x1], 0  ;;  %s3647_s18 = smov 0   ;;  %s3649_s19 = smov 0  }
   0x6   :  { %s3651_s20 = smov 0   ;;  %s3653_s21 = smov 0  }
   0x7 LB: > { %s3668_s22 = sadd.s32 4294967295, %s3604_s21   ;;  %s2424_s23 = sadd.s32 4294967294, %s3604_s21   ;;  %s3604_s21 = sphi %s3653_s21, %s4254_s21   ;;  %s3600_s20 = sphi %s3651_s20, %s4258_s20   ;;  %s3596_s19 = sphi %s3649_s19, %s4257_s19   ;;  %s3592_s18 = sphi %s3647_s18, %s4256_s18  }
   0x8   : > { %s3672_s24 = sadd.s32 1, %s3604_s21   ;;  %s69_s25 = sadd.s32 1, %s3600_s20 }
   0x9   : > { %4229 = sst [smem:[#allocation15_spill]] %s3672_s24  ;;  %s66_s26 = ssub.s32 %s3604_s21, %s3672_s24 }
   0xa   : > { %p76_p0 = scmp.ne.s32.totalorder %s3600_s20, %s3596_s19  ;;  %p67_p1 = scmp.eq.s32.totalorder %s66_s26, 0 }
   0xb   : > { %p77_p2 = scmp.eq.s32.totalorder %s3604_s21, 0  ;;  %p82_p3 = scmp.ne.s32.totalorder %s3596_s19, %s3592_s18 }
   0xc   : > { %p4221_p4 = scmp.eq.s32.totalorder %s3668_s22, 0  ;;  %p148_p7 = scmp.eq.s32.totalorder %s3668_s22, 1 }
   0xd   : > { %s3684_s27 = scalar_select %p67_p1, %s3600_s20, %s69_s25  }
   0xe   : > { %p3686_p5 = por %p77_p2, %p76_p0  ;;  %p3692_p6 = por %p4221_p4, %p82_p3 }
   0xf   : > { %4230 = sst [smem:[#allocation16_spill]] %s3684_s27  ;;  %p154_p8 = scmp.eq.s32.totalorder %s2424_s23, 1 }
  0x10   : > { %s4231_s28 = scalar_select %p3686_p5, 1, 0 }
  0x11   : > { %s4232_s29 = scalar_select %p3692_p6, 1, 0 }
  0x12   : > { %p2425_p9 = scmp.ge.s32.totalorder %s3604_s21, 1  ;;  %p161_p10 = scmp.lt.s32.totalorder %s3604_s21, 3 }
  0x13   : > { %p3699_p11 = por %p148_p7, %p76_p0  ;;  %p3703_p12 = por %p154_p8, %p82_p3 }
  0x14   : > { %p3707_p13 = pnand %p2425_p9, %p161_p10  ;;  %s3606_s8 = smov [#allocation2]  }
  0x15   : > { %s4233_s30 = scalar_select %p3699_p11, 1, 0 }
  0x16   : > { %s4234_s6 = scalar_select %p3703_p12, 1, 0 }
  0x17   : > { %s4235_s7 = scalar_select %p3707_p13, 1, 0 }
  0x18   : > { %p3203_p1 = pneg %p3707_p13  ;;  %s173_s9 = sshll.u32 %s3606_s8, 4  ;;  %s174_s9 = int_to_ptr.vmem [resolvable:$true] %s173_s9 }
  0x19   : > { %s3607_s11 = smov [#allocation5]   ;;  %s4237_s0 = sld [smem:[#allocation17_spill]] }
  0x1a   : > { %p3715_p2 = pnand %p3203_p1, %p4221_p4  ;;  %s186_s12 = sshll.u32 %s3607_s11, 4  ;;  %s187_s12 = int_to_ptr.vmem [resolvable:$true] %s186_s12 }
  0x1c   : > { %p3729_p8 = pneg %p3715_p2 }
  0x1f   : > { %s3412_s15 = scalar_lea.hbm %s4237_s0, 4096 }
  0x20   : > { %p3413_p7 = scmp.ne.s32.totalorder %s4237_s0, %s3412_s15  ;;  %p3419_p1 = scmp.lt.u32.totalorder %s3412_s15, %s4237_s0 }
  0x22   : > { %p3415_p9 = pnand %p3729_p8, %p3413_p7 }
  0x24   : > { %p3416_p10 = pneg %p3415_p9 }
  0x26   : > { %p3421_p0 = pnand %p3419_p1, %p3416_p10 }
  0x28   : > { %3424 = shalt.err (!%p3421_p0)
}
  0x29   : > { %s3425_s8 = scalar_lea.vmem %s174_s9, 4096  ;;  %p3433_p11 = scmp.lt.s32.totalorder %s174_s9, %s174_s9 }
  0x2a   : > { %p3426_p4 = scmp.ne.s32.totalorder %s174_s9, %s3425_s8  ;;  %p3434_p6 = scmp.lt.s32.totalorder %s3425_s8, %s3425_s8 }
  0x2c   : > { %p3428_p3 = pnand %p3426_p4, %p3729_p8  ;;  %p3435_p13 = por %p3434_p6, %p3433_p11 }
  0x2e   : > { %p3429_p12 = pneg %p3428_p3 }
  0x30   : > { %p3436_p5 = pnand %p3435_p13, %p3429_p12 }
  0x32   : > { %3439 = shalt.err (!%p3436_p5)
}
  0x33   : > { %s3608_s11 = smov 128   ;;  %s3609_s13 = smov 8  }
  0x34   : > { %3206 = dma.hbm_to_vmem [thread:$0]  (!%p3715_p2), %s4237_s0, 4096, %s174_s9, [#allocation3], %s3608_s11, %s3608_s11, %s3609_s13  }
  0x35   : > { %p4239_p0 = scmp.ne.s32.totalorder %s4231_s28, 0  ;;  %p4240_p7 = scmp.lt.s32.totalorder %s3604_s21, 2 }
  0x36   : > { %s3440_s26 = scalar_lea.hbm %s4216_s1, 512 }
  0x37   : > { %p3749_p4 = pnand %p4240_p7, %p4239_p0  ;;  %p3441_p5 = scmp.ne.s32.totalorder %s4216_s1, %s3440_s26 }
  0x38   : > { %p3447_p12 = scmp.lt.u32.totalorder %s3440_s26, %s4216_s1 }
  0x39   : > { %s4241_s16 = scalar_select %p3749_p4, 1, 0 }
  0x3a   : > { %p3443_p6 = pnand %p3441_p5, %p3729_p8 }
  0x3c   : > { %p3444_p11 = pneg %p3443_p6 }
  0x3e   : > { %p3449_p13 = pnand %p3447_p12, %p3444_p11 }
  0x40   : > { %3452 = shalt.err (!%p3449_p13)
}
  0x41   : > { %s3453_s28 = scalar_lea.vmem %s187_s12, 512  ;;  %p3461_p1 = scmp.lt.s32.totalorder %s187_s12, %s187_s12 }
  0x42   : > { %p3454_p3 = scmp.ne.s32.totalorder %s187_s12, %s3453_s28  ;;  %p3462_p0 = scmp.lt.s32.totalorder %s3453_s28, %s3453_s28 }
  0x44   : > { %p3456_p9 = pnand %p3454_p3, %p3729_p8  ;;  %p3463_p7 = por %p3462_p0, %p3461_p1 }
  0x46   : > { %p3457_p10 = pneg %p3456_p9 }
  0x48   : > { %p3464_p4 = pnand %p3463_p7, %p3457_p10 }
  0x4a   : > { %3467 = shalt.err (!%p3464_p4)
}
  0x4b   : > { %3209 = dma.hbm_to_vmem [thread:$0]  (!%p3715_p2), %s4216_s1, 512, %s187_s12, [#allocation6], %s3608_s11, %s3608_s11, %s3609_s13  }
  0x4c   : > { %s3610_s17 = smov [#allocation8]   ;;  %s3468_s14 = scalar_lea.hbm %s4218_s3, 5120 }
  0x4d   : > { %s199_s25 = sshll.u32 %s3610_s17, 4  ;;  %p3469_p5 = scmp.ne.s32.totalorder %s4218_s3, %s3468_s14  ;;  %s200_s25 = int_to_ptr.vmem [resolvable:$true] %s199_s25 }
  0x4e   : > { %p3475_p11 = scmp.lt.u32.totalorder %s3468_s14, %s4218_s3 }
  0x4f   : > { %p3471_p4 = pnand %p3469_p5, %p3729_p8 }
  0x51   : > { %p3472_p6 = pneg %p3471_p4 }
  0x53   : > { %p3477_p12 = pnand %p3475_p11, %p3472_p6 }
  0x55   : > { %3480 = shalt.err (!%p3477_p12)
}
  0x56   : > { %s3481_s12 = scalar_lea.vmem %s200_s25, 5120  ;;  %p3489_p10 = scmp.lt.s32.totalorder %s200_s25, %s200_s25 }
  0x57   : > { %p3482_p13 = scmp.ne.s32.totalorder %s200_s25, %s3481_s12  ;;  %p3490_p1 = scmp.lt.s32.totalorder %s3481_s12, %s3481_s12 }
  0x59   : > { %p3484_p3 = pnand %p3482_p13, %p3729_p8  ;;  %p3491_p0 = por %p3490_p1, %p3489_p10 }
  0x5b   : > { %p3485_p9 = pneg %p3484_p3 }
  0x5d   : > { %p3492_p7 = pnand %p3491_p0, %p3485_p9 }
  0x5f   : > { %3495 = shalt.err (!%p3492_p7)
}
  0x60   : > { %s3611_s0 = smov 64   ;;  %s3612_s24 = smov 4  }
  0x61   : > { %3212 = dma.hbm_to_vmem [thread:$0]  (!%p3715_p2), %s4218_s3, 5120, %s200_s25, [#allocation6], %s3611_s0, %s3611_s0, %s3612_s24  }
  0x62   : > { %s216_s13 = sand.u32 1, %s3604_s21   ;;  %s218_s27 = sand.u32 1, %s3600_s20  }
  0x63   : > { %s2430_s15 = sshll.u32 %s218_s27, 7  ;;  %s2545_s17 = sshll.u32 %s3604_s21, 11 }
  0x64   : > { %s3798_s14 = scalar_lea.hbm %s4217_s2, %s2545_s17  ;;  %s220_s10 = scalar_lea.vmem [#allocation7], %s2430_s15 }
  0x65   : > { %s227_s9 = sshll.u32 %s220_s10, 4  ;;  %s3802_s28 = scalar_lea.sflag [#allocation3], %s216_s13  ;;  %s3800_s9 = int_to_ptr.vmem [resolvable:$true] %s227_s9 }
  0x66   : > { %s3496_s25 = scalar_lea.hbm %s3798_s14, 2048  ;;  %p4242_p8 = scmp.ne.s32.totalorder %s4241_s16, 0 }
  0x67   : > { %p3497_p2 = scmp.ne.s32.totalorder %s3798_s14, %s3496_s25  ;;  %s3501_s11 = scalar_lea.hbm %s4217_s2, 4096 }
  0x68   : > { %p3498_p5 = pneg %p4242_p8  ;;  %p3502_p11 = scmp.lt.u32.totalorder %s3798_s14, %s4217_s2 }
  0x69   : > { %p3503_p12 = scmp.lt.u32.totalorder %s3501_s11, %s3496_s25  ;;  %p3505_p3 = scmp.lt.u32.totalorder %s3496_s25, %s3798_s14 }
  0x6a   : > { %p3499_p4 = pnand %p3498_p5, %p3497_p2 }
  0x6b   : > { %p3504_p13 = por %p3503_p12, %p3502_p11 }
  0x6c   : > { %p3500_p6 = pneg %p3499_p4 }
  0x6d   : > { %p3506_p9 = por %p3505_p3, %p3504_p13 }
  0x6f   : > { %p3507_p10 = pnand %p3506_p9, %p3500_p6 }
  0x71   : > { %3510 = shalt.err (!%p3507_p10)
}
  0x72   : > { %s3511_s13 = scalar_lea.vmem %s3800_s9, 2048  ;;  %s3613_s15 = smov [#allocation7]  }
  0x73   : > { %p3512_p1 = scmp.ne.s32.totalorder %s3800_s9, %s3511_s13  ;;  %s3516_s26 = sshll.u32 %s3613_s15, 4  ;;  %s3517_s26 = int_to_ptr.vmem [resolvable:$false] %s3516_s26 }
  0x74   : > { %s3518_s8 = scalar_lea.vmem %s3517_s26, 4096  ;;  %p3519_p2 = scmp.lt.s32.totalorder %s3800_s9, %s3517_s26 }
  0x75   : > { %p3514_p0 = pnand %p3512_p1, %p3498_p5  ;;  %p3520_p4 = scmp.lt.s32.totalorder %s3518_s8, %s3511_s13 }
  0x77   : > { %p3515_p7 = pneg %p3514_p0  ;;  %p3521_p11 = por %p3520_p4, %p3519_p2 }
  0x79   : > { %p3522_p12 = pnand %p3521_p11, %p3515_p7 }
  0x7b   : > { %3525 = shalt.err (!%p3522_p12)
}
  0x7c   : > { %3216 = dma.hbm_to_vmem [thread:$0]  (!%p4242_p8), %s3798_s14, 2048, %s3800_s9, %s3802_s28, %s3611_s0, %s3611_s0, %s3612_s24  }
  0x7d   : > { %p4243_p5 = scmp.ne.s32.totalorder %s4235_s7, 0 }
  0x7e   : > { %p4244_p6 = scmp.eq.s32.totalorder (!%p4243_p5), %s3668_s22, 0 }
  0x7f   : > { %239 = sbr.rel (%p4243_p5) target bundleno = 2564 (0xa04), region = 40 }
  0x86   : > { %3571 = dma.done.wait (%p4244_p6), [#allocation3], 4096   ;;  %p4245_p13 = pmov %p4244_p6 }
  0x87   : > { %p4246_p3 = pmov %p4244_p6 }
  0x88   : > { %3573 = vsyncadd (%p4245_p13), [#allocation3], 4294963200 }
  0x89   : > { %3575 = dma.done.wait (%p4246_p3), [#allocation6], 512   ;;  %p4247_p9 = pmov %p4246_p3 }
  0x8a   : > { %s249_s16 = sand.u32 1, %s3668_s22   ;;  %s3845_s0 = sand.u32 1, %s3596_s19  }
  0x8b   : > { %3577 = vsyncadd (%p4247_p9), [#allocation6], 4294966784  ;;  %s2436_s7 = sshll.u32 %s3845_s0, 7  ;;  %s250_s24 = scalar_lea.sflag [#allocation3], %s249_s16 }
  0x8c   : > { %s3848_s14 = scalar_lea.vmem [#allocation7], %s2436_s7  ;;  %p4248_p8 = scmp.ne.s32.totalorder %s4232_s29, 0 }
  0x8e   : > { %3579 = dma.done.wait (%p4248_p8), %s250_s24, 2048  }
  0x8f   : > { %3581 = vsyncadd (%p4248_p8), %s250_s24, 4294965248  ;;  %p4249_p10 = pmov %p4246_p3 }
  0x90   : > { %p4250_p1 = pmov %p4246_p3 }
  0x91   : > { %3583 = dma.done.wait (%p4249_p10), [#allocation6], 5120  }
  0x92   : > { %3585 = vsyncadd (%p4250_p1), [#allocation6], 4294962176  ;;  %v3270_v0 = vld [vmem:[%s3848_s14 + $0x40] sm:$0xff]   ;;  %v3272_v2 = vld [vmem:[%s3848_s14 + $0x48] sm:$0xff]   ;;  %s2438_s27 = sshll.u32 %s3845_s0, 5  ;;  %s2546_s8 = sshll.u32 %s3668_s22, 9 }
  0x93   : > { %v3271_v1 = vld [vmem:[%s3848_s14] sm:$0xff]   ;;  %2547 = vmatprep.subr.bf16.mxu0 %v3270_v0  ;;  %v3273_v3 = vld [vmem:[%s3848_s14 + $0x8] sm:$0xff]   ;;  %v3274_v4 = vld [vmem:[%s3848_s14 + $0x50] sm:$0xff]   ;;  %s283_s15 = scalar_lea.vmem [#allocation9], %s2438_s27  ;;  %s4171_s24 = scalar_lea.hbm %s4220_s5, %s2546_s8 }
  0x94   : > { %2548 = vmatpush3.bf16.msra.mxu0 %v3271_v1  ;;  %v3275_v5 = vld [vmem:[%s3848_s14 + $0x10] sm:$0xff]   ;;  %v3276_v6 = vld [vmem:[%s3848_s14 + $0x58] sm:$0xff]   ;;  %v3278_v8 = vld [vmem:[%s3848_s14 + $0x60] sm:$0xff]   ;;  %s2323_s26 = sshll.u32 %s283_s15, 4  ;;  %s2310_s22 = scalar_lea.sflag [#allocation4], %s3845_s0  ;;  %s4166_s26 = int_to_ptr.vmem [resolvable:$true] %s2323_s26 }
  0x95   : > { %2549 = vmatprep.subr.bf16.mxu0 %v3272_v2  ;;  %v3277_v7 = vld [vmem:[%s3848_s14 + $0x18] sm:$0xff]   ;;  %v3279_v9 = vld [vmem:[%s3848_s14 + $0x20] sm:$0xff]   ;;  %v3280_v10 = vld [vmem:[%s3848_s14 + $0x68] sm:$0xff]   ;;  %p4251_p7 = scmp.ne.s32.totalorder %s4233_s30, 0  ;;  %s3614_s29 = smov [#allocation9]  }
  0x96   : > { %v3869_v11 = vld [vmem:[#allocation2 + $0x4] ss:$8 sps:$4 sm:$0xff]   ;;  %v3282_v13 = vld [vmem:[%s3848_s14 + $0x70] sm:$0xff]   ;;  %v3284_v15 = vld [vmem:[%s3848_s14 + $0x78] sm:$0xff]   ;;  %s3530_s10 = sshll.u32 %s3614_s29, 4  ;;  %s3531_s10 = int_to_ptr.vmem [resolvable:$false] %s3530_s10 }
  0x97   : > { %641 = vmatprep.mubr.bf16.mxu0 %v3869_v11  ;;  %v3281_v12 = vld [vmem:[%s3848_s14 + $0x28] sm:$0xff]   ;;  %v3283_v14 = vld [vmem:[%s3848_s14 + $0x30] sm:$0xff]   ;;  %v3285_v16 = vld [vmem:[%s3848_s14 + $0x38] sm:$0xff]   ;;  %s3526_s14 = scalar_lea.vmem %s4166_s26, 512  ;;  %s3532_s9 = scalar_lea.vmem %s3531_s10, 1024 }
  0x98   : > { %2550 = vmatpush3.bf16.msra.mxu0 %v3273_v3  ;;  %v3877_v17 = vld [vmem:[#allocation2] ss:$8 sps:$4 sm:$0xff]   ;;  %v3879_v18 = vld [vmem:[#allocation2 + $0x14] ss:$8 sps:$4 sm:$0xff]   ;;  %v3883_v19 = vld [vmem:[#allocation2 + $0x10] ss:$8 sps:$4 sm:$0xff]   ;;  %p3527_p0 = scmp.ne.s32.totalorder %s4166_s26, %s3526_s14  ;;  %p3533_p11 = scmp.lt.s32.totalorder %s4166_s26, %s3531_s10 }
  0x99   : > { %2551 = vmatprep.subr.bf16.mxu0 %v3274_v4  ;;  %v3885_v20 = vld [vmem:[#allocation2 + $0x24] ss:$8 sps:$4 sm:$0xff]   ;;  %v3336_v23 = vld [vmem:[#allocation8 + $0x10] sm:$0xff]   ;;  %v3889_v24 = vld [vmem:[#allocation2 + $0x20] ss:$8 sps:$4 sm:$0xff]   ;;  %p3534_p12 = scmp.lt.s32.totalorder %s3532_s9, %s3526_s14 }
  0x9a   : > { %v3334_v21 = vld [vmem:[#allocation8] sm:$0xff]   ;;  %v3335_v22 = vld [vmem:[#allocation8 + $0x8] sm:$0xff]   ;;  %v3337_v25 = vld [vmem:[#allocation8 + $0x18] sm:$0xff]   ;;  %p3528_p2 = pnand %p3527_p0, %p4251_p7 }
  0x9b   : > { %3003 = vmatprep.subr.bf16.mxu1 %v3334_v21  ;;  %v3891_v26 = vld [vmem:[#allocation2 + $0x34] ss:$8 sps:$4 sm:$0xff]   ;;  %v3895_v27 = vld [vmem:[#allocation2 + $0x30] ss:$8 sps:$4 sm:$0xff]   ;;  %v3897_v28 = vld [vmem:[#allocation2 + $0x44] ss:$8 sps:$4 sm:$0xff]   ;;  %p3535_p5 = por %p3534_p12, %p3533_p11 }
  0x9c   : > { %2552 = vmatpush3.bf16.msra.mxu0 %v3275_v5  ;;  %3004 = vmatpush3.bf16.msra.mxu1 %v3334_v21  ;;  %v3901_v29 = vld [vmem:[#allocation2 + $0x40] ss:$8 sps:$4 sm:$0xff]   ;;  %v3903_v30 = vld [vmem:[#allocation2 + $0x54] ss:$8 sps:$4 sm:$0xff]   ;;  %v3907_v31 = vld [vmem:[#allocation2 + $0x50] ss:$8 sps:$4 sm:$0xff]   ;;  %p3529_p4 = pneg %p3528_p2 }
  0x9d   : > { %2553 = vmatprep.subr.bf16.mxu0 %v3276_v6  ;;  %3005 = vmatprep.subr.bf16.mxu1 %v3335_v22  ;;  %v3909_v32 = vld [vmem:[#allocation2 + $0x64] ss:$8 sps:$4 sm:$0xff]   ;;  %v3913_v33 = vld [vmem:[#allocation2 + $0x60] ss:$8 sps:$4 sm:$0xff]   ;;  %v3915_v34 = vld [vmem:[#allocation2 + $0x74] ss:$8 sps:$4 sm:$0xff]  }
  0x9e   : > { %v3919_v35 = vld [vmem:[#allocation2 + $0x70] ss:$8 sps:$4 sm:$0xff]   ;;  %v3921_v36 = vld [vmem:[#allocation2 + $0x84] ss:$8 sps:$4 sm:$0xff]   ;;  %v3925_v37 = vld [vmem:[#allocation2 + $0x80] ss:$8 sps:$4 sm:$0xff]   ;;  %p3536_p6 = pnand %p3535_p5, %p3529_p4 }
  0x9f   : > { %v3927_v38 = vld [vmem:[#allocation2 + $0x94] ss:$8 sps:$4 sm:$0xff]   ;;  %v3931_v39 = vld [vmem:[#allocation2 + $0x90] ss:$8 sps:$4 sm:$0xff]   ;;  %v3933_v40 = vld [vmem:[#allocation2 + $0xa4] ss:$8 sps:$4 sm:$0xff]  }
  0xa0   : > { %2554 = vmatpush3.bf16.msra.mxu0 %v3277_v7  ;;  %3006 = vmatpush3.bf16.msra.mxu1 %v3335_v22  ;;  %v3937_v41 = vld [vmem:[#allocation2 + $0xa0] ss:$8 sps:$4 sm:$0xff]   ;;  %v3939_v42 = vld [vmem:[#allocation2 + $0xb4] ss:$8 sps:$4 sm:$0xff]   ;;  %v3943_v44 = vld [vmem:[#allocation2 + $0xb0] ss:$8 sps:$4 sm:$0xff]  }
  0xa1   : > { %2555 = vmatprep.subr.bf16.mxu0 %v3278_v8  ;;  %3007 = vmatprep.subr.bf16.mxu1 %v3336_v23  ;;  %v3338_v43 = vld [vmem:[#allocation8 + $0x20] sm:$0xff]   ;;  %v3339_v46 = vld [vmem:[#allocation8 + $0x28] sm:$0xff]   ;;  %v3340_v47 = vld [vmem:[#allocation8 + $0x30] sm:$0xff]  }
  0xa2   : > { %v3945_v45 = vld [vmem:[#allocation2 + $0xc4] ss:$8 sps:$4 sm:$0xff]   ;;  %v3949_v48 = vld [vmem:[#allocation2 + $0xc0] ss:$8 sps:$4 sm:$0xff]   ;;  %v3951_v49 = vld [vmem:[#allocation2 + $0xd4] ss:$8 sps:$4 sm:$0xff]  }
  0xa3   : > { %v3341_v50 = vld [vmem:[#allocation8 + $0x38] sm:$0xff]   ;;  %v3957_v52 = vld [vmem:[#allocation2 + $0xe4] ss:$8 sps:$4 sm:$0xff]   ;;  %v3961_v53 = vld [vmem:[#allocation2 + $0xe0] ss:$8 sps:$4 sm:$0xff]  }
  0xa4   : > { %2556 = vmatpush3.bf16.msra.mxu0 %v3279_v9  ;;  %3008 = vmatpush3.bf16.msra.mxu1 %v3336_v23  ;;  %v3955_v51 = vld [vmem:[#allocation2 + $0xd0] ss:$8 sps:$4 sm:$0xff]   ;;  %v3963_v54 = vld [vmem:[#allocation2 + $0xf4] ss:$8 sps:$4 sm:$0xff]  }
  0xa5   : > { %2557 = vmatprep.subr.bf16.mxu0 %v3280_v10  ;;  %3009 = vmatprep.subr.bf16.mxu1 %v3337_v25  ;;  %v3967_v55 = vld [vmem:[#allocation2 + $0xf0] ss:$8 sps:$4 sm:$0xff]  }
  0xa8   : > { %2558 = vmatpush3.bf16.msra.mxu0 %v3281_v12  ;;  %3010 = vmatpush3.bf16.msra.mxu1 %v3337_v25 }
  0xa9   : > { %2559 = vmatprep.subr.bf16.mxu0 %v3282_v13  ;;  %3011 = vmatprep.subr.bf16.mxu1 %v3338_v43 }
  0xac   : > { %2560 = vmatpush3.bf16.msra.mxu0 %v3283_v14  ;;  %3012 = vmatpush3.bf16.msra.mxu1 %v3338_v43 }
  0xad   : > { %2561 = vmatprep.subr.bf16.mxu0 %v3284_v15  ;;  %3013 = vmatprep.subr.bf16.mxu1 %v3339_v46 }
  0xb0   : > { %2562 = vmatpush3.bf16.msra.mxu0 %v3285_v16  ;;  %3014 = vmatpush3.bf16.msra.mxu1 %v3339_v46 }
  0xb1   : > { %3015 = vmatprep.subr.bf16.mxu1 %v3340_v47 }
  0xb3   : > { %642 = vmatmul.mubr.bf16.vlgmr.msra.gmra.mrb[0].mxu0 %v3877_v17 }
  0xb4   : > { %649 = vmatprep.mubr.bf16.mxu0 %v3879_v18  ;;  %3016 = vmatpush3.bf16.msra.mxu1 %v3340_v47 }
  0xb5   : > { %3017 = vmatprep.subr.bf16.mxu1 %v3341_v50 }
  0xb8   : > { %3018 = vmatpush3.bf16.msra.mxu1 %v3341_v50 }
  0xbb   : > { %650 = vmatmul.mubr.bf16.gmra.mrb[4].mxu0 %v3883_v19 }
  0xbc   : > { %657 = vmatprep.mubr.bf16.mxu0 %v3885_v20 }
  0xc3   : > { %658 = vmatmul.mubr.bf16.gmra.mrb[8].mxu0 %v3889_v24 }
  0xc4   : > { %665 = vmatprep.mubr.bf16.mxu0 %v3891_v26 }
  0xcb   : > { %666 = vmatmul.mubr.bf16.gmra.mrb[12].mxu0 %v3895_v27 }
  0xcc   : > { %673 = vmatprep.mubr.bf16.mxu0 %v3897_v28 }
  0xd3   : > { %674 = vmatmul.mubr.bf16.gmra.mrb[16].mxu0 %v3901_v29 }
  0xd4   : > { %681 = vmatprep.mubr.bf16.mxu0 %v3903_v30 }
  0xdb   : > { %682 = vmatmul.mubr.bf16.gmra.mrb[20].mxu0 %v3907_v31 }
  0xdc   : > { %689 = vmatprep.mubr.bf16.mxu0 %v3909_v32 }
  0xe3   : > { %690 = vmatmul.mubr.bf16.gmra.mrb[24].mxu0 %v3913_v33 }
  0xe4   : > { %697 = vmatprep.mubr.bf16.mxu0 %v3915_v34 }
  0xeb   : > { %698 = vmatmul.mubr.bf16.gmra.mrb[28].mxu0 %v3919_v35 }
  0xec   : > { %705 = vmatprep.mubr.bf16.mxu0 %v3921_v36 }
  0xf3   : > { %706 = vmatmul.mubr.bf16.gmra.mrb[32].mxu0 %v3925_v37 }
  0xf4   : > { %713 = vmatprep.mubr.bf16.mxu0 %v3927_v38 }
  0xfb   : > { %714 = vmatmul.mubr.bf16.gmra.mrb[36].mxu0 %v3931_v39 }
  0xfc   : > { %721 = vmatprep.mubr.bf16.mxu0 %v3933_v40 }
 0x103   : > { %722 = vmatmul.mubr.bf16.gmra.mrb[40].mxu0 %v3937_v41 }
 0x104   : > { %729 = vmatprep.mubr.bf16.mxu0 %v3939_v42 }
 0x10b   : > { %730 = vmatmul.mubr.bf16.gmra.mrb[44].mxu0 %v3943_v44 }
 0x10c   : > { %737 = vmatprep.mubr.bf16.mxu0 %v3945_v45 }
 0x113   : > { %738 = vmatmul.mubr.bf16.gmra.mrb[48].mxu0 %v3949_v48 }
 0x114   : > { %745 = vmatprep.mubr.bf16.mxu0 %v3951_v49 }
 0x11b   : > { %746 = vmatmul.mubr.bf16.gmra.mrb[52].mxu0 %v3955_v51 }
 0x11c   : > { %753 = vmatprep.mubr.bf16.mxu0 %v3957_v52 }
 0x123   : > { %754 = vmatmul.mubr.bf16.gmra.mrb[56].mxu0 %v3961_v53 }
 0x124   : > { %761 = vmatprep.mubr.bf16.mxu0 %v3963_v54 }
 0x12b   : > { %762 = vmatmul.mubr.bf16.gmra.mrb[60].mxu0 %v3967_v55 }
 0x186   : > { %v2563_v56 = vpop.f32.mrb[0].mxu0 }
 0x187   : > { %v2564_v57 = vpop.f32.mrb[1].mxu0 }
 0x188   : > { %v2565_v58 = vadd.f32 %v2564_v57, %v2563_v56  ;;  %v2566_v59 = vpop.f32.mrb[2].mxu0 }
 0x189   : > { %v2567_v60 = vpop.f32.mrb[3].mxu0 }
 0x18a   : > { %v2568_v61 = vadd.f32 %v2567_v60, %v2566_v59 }
 0x18c   : > { %v770_v62 = vpack.c.bf16 %v2568_v61, %v2565_v58 }
 0x18e   : > { %v2569_v63 = vpop.f32.mrb[4].mxu0  ;;  %3019 = vmatprep.mubr.bf16.mxu1 %v770_v62 }
 0x18f   : > { %v2570_v0 = vpop.f32.mrb[5].mxu0 }
 0x190   : > { %v2571_v1 = vadd.f32 %v2570_v0, %v2569_v63  ;;  %v2572_v2 = vpop.f32.mrb[6].mxu0 }
 0x191   : > { %v2573_v3 = vpop.f32.mrb[7].mxu0 }
 0x192   : > { %v2574_v4 = vadd.f32 %v2573_v3, %v2572_v2 }
 0x194   : > { %v771_v5 = vpack.c.bf16 %v2574_v4, %v2571_v1 }
 0x196   : > { %v2575_v6 = vpop.f32.mrb[8].mxu0  ;;  %3020 = vmatmul.mubr.bf16.vlgmr.msra.gmra.mrb[0].mxu1 %v771_v5 }
 0x197   : > { %v2576_v7 = vpop.f32.mrb[9].mxu0 }
 0x198   : > { %v2577_v8 = vadd.f32 %v2576_v7, %v2575_v6  ;;  %v2578_v9 = vpop.f32.mrb[10].mxu0 }
 0x199   : > { %v2579_v10 = vpop.f32.mrb[11].mxu0 }
 0x19a   : > { %v2580_v12 = vadd.f32 %v2579_v10, %v2578_v9 }
 0x19c   : > { %v772_v13 = vpack.c.bf16 %v2580_v12, %v2577_v8 }
 0x19e   : > { %v2581_v14 = vpop.f32.mrb[12].mxu0  ;;  %3023 = vmatprep.mubr.bf16.mxu1 %v772_v13 }
 0x19f   : > { %v2582_v15 = vpop.f32.mrb[13].mxu0 }
 0x1a0   : > { %v2583_v16 = vadd.f32 %v2582_v15, %v2581_v14  ;;  %v2584_v21 = vpop.f32.mrb[14].mxu0 }
 0x1a1   : > { %v2585_v22 = vpop.f32.mrb[15].mxu0 }
 0x1a2   : > { %v2586_v23 = vadd.f32 %v2585_v22, %v2584_v21 }
 0x1a4   : > { %v773_v25 = vpack.c.bf16 %v2586_v23, %v2583_v16 }
 0x1a6   : > { %v2587_v43 = vpop.f32.mrb[16].mxu0  ;;  %3024 = vmatmul.mubr.bf16.gmra.mrb[4].mxu1 %v773_v25 }
 0x1a7   : > { %v2588_v46 = vpop.f32.mrb[17].mxu0 }
 0x1a8   : > { %v2589_v47 = vadd.f32 %v2588_v46, %v2587_v43  ;;  %v2590_v50 = vpop.f32.mrb[18].mxu0 }
 0x1a9   : > { %v2591_v56 = vpop.f32.mrb[19].mxu0 }
 0x1aa   : > { %v2592_v57 = vadd.f32 %v2591_v56, %v2590_v50 }
 0x1ac   : > { %v774_v58 = vpack.c.bf16 %v2592_v57, %v2589_v47 }
 0x1ae   : > { %v2593_v59 = vpop.f32.mrb[20].mxu0  ;;  %3027 = vmatprep.mubr.bf16.mxu1 %v774_v58 }
 0x1af   : > { %v2594_v60 = vpop.f32.mrb[21].mxu0 }
 0x1b0   : > { %v2595_v61 = vadd.f32 %v2594_v60, %v2593_v59  ;;  %v2596_v62 = vpop.f32.mrb[22].mxu0 }
 0x1b1   : > { %v2597_v63 = vpop.f32.mrb[23].mxu0 }
 0x1b2   : > { %v2598_v0 = vadd.f32 %v2597_v63, %v2596_v62 }
 0x1b4   : > { %v775_v1 = vpack.c.bf16 %v2598_v0, %v2595_v61 }
 0x1b6   : > { %v2599_v2 = vpop.f32.mrb[24].mxu0  ;;  %3028 = vmatmul.mubr.bf16.gmra.mrb[8].mxu1 %v775_v1 }
 0x1b7   : > { %v2600_v3 = vpop.f32.mrb[25].mxu0 }
 0x1b8   : > { %v2601_v4 = vadd.f32 %v2600_v3, %v2599_v2  ;;  %v2602_v5 = vpop.f32.mrb[26].mxu0 }
 0x1b9   : > { %v2603_v6 = vpop.f32.mrb[27].mxu0 }
 0x1ba   : > { %v2604_v7 = vadd.f32 %v2603_v6, %v2602_v5 }
 0x1bc   : > { %v776_v8 = vpack.c.bf16 %v2604_v7, %v2601_v4 }
 0x1be   : > { %v2605_v9 = vpop.f32.mrb[28].mxu0  ;;  %3031 = vmatprep.mubr.bf16.mxu1 %v776_v8 }
 0x1bf   : > { %v2606_v10 = vpop.f32.mrb[29].mxu0 }
 0x1c0   : > { %v2607_v12 = vadd.f32 %v2606_v10, %v2605_v9  ;;  %v2608_v13 = vpop.f32.mrb[30].mxu0 }
 0x1c1   : > { %v2609_v14 = vpop.f32.mrb[31].mxu0 }
 0x1c2   : > { %v2610_v15 = vadd.f32 %v2609_v14, %v2608_v13 }
 0x1c4   : > { %v777_v16 = vpack.c.bf16 %v2610_v15, %v2607_v12 }
 0x1c6   : > { %v2611_v21 = vpop.f32.mrb[32].mxu0  ;;  %3032 = vmatmul.mubr.bf16.gmra.mrb[12].mxu1 %v777_v16 }
 0x1c7   : > { %v2612_v22 = vpop.f32.mrb[33].mxu0 }
 0x1c8   : > { %v2613_v23 = vadd.f32 %v2612_v22, %v2611_v21  ;;  %v2614_v25 = vpop.f32.mrb[34].mxu0 }
 0x1c9   : > { %v2615_v43 = vpop.f32.mrb[35].mxu0 }
 0x1ca   : > { %v2616_v46 = vadd.f32 %v2615_v43, %v2614_v25 }
 0x1cc   : > { %v778_v47 = vpack.c.bf16 %v2616_v46, %v2613_v23 }
 0x1ce   : > { %v2617_v50 = vpop.f32.mrb[36].mxu0  ;;  %3035 = vmatprep.mubr.bf16.mxu1 %v778_v47 }
 0x1cf   : > { %v2618_v56 = vpop.f32.mrb[37].mxu0 }
 0x1d0   : > { %v2619_v57 = vadd.f32 %v2618_v56, %v2617_v50  ;;  %v2620_v58 = vpop.f32.mrb[38].mxu0 }
 0x1d1   : > { %v2621_v59 = vpop.f32.mrb[39].mxu0 }
 0x1d2   : > { %v2622_v60 = vadd.f32 %v2621_v59, %v2620_v58 }
 0x1d4   : > { %v779_v61 = vpack.c.bf16 %v2622_v60, %v2619_v57 }
 0x1d6   : > { %v2623_v62 = vpop.f32.mrb[40].mxu0  ;;  %3036 = vmatmul.mubr.bf16.gmra.mrb[16].mxu1 %v779_v61 }
 0x1d7   : > { %v2624_v63 = vpop.f32.mrb[41].mxu0 }
 0x1d8   : > { %v2625_v0 = vadd.f32 %v2624_v63, %v2623_v62  ;;  %v2626_v1 = vpop.f32.mrb[42].mxu0 }
 0x1d9   : > { %v2627_v2 = vpop.f32.mrb[43].mxu0 }
 0x1da   : > { %v2628_v3 = vadd.f32 %v2627_v2, %v2626_v1 }
 0x1dc   : > { %v780_v4 = vpack.c.bf16 %v2628_v3, %v2625_v0 }
 0x1de   : > { %v2629_v5 = vpop.f32.mrb[44].mxu0  ;;  %3039 = vmatprep.mubr.bf16.mxu1 %v780_v4 }
 0x1df   : > { %v2630_v6 = vpop.f32.mrb[45].mxu0 }
 0x1e0   : > { %v2631_v7 = vadd.f32 %v2630_v6, %v2629_v5  ;;  %v2632_v8 = vpop.f32.mrb[46].mxu0 }
 0x1e1   : > { %v2633_v9 = vpop.f32.mrb[47].mxu0 }
 0x1e2   : > { %v2634_v10 = vadd.f32 %v2633_v9, %v2632_v8  ;;  %v3974_v8 = vld [vmem:[%s4219_s4] ss:$0 sm:$0xff] }
 0x1e4   : > { %v781_v12 = vpack.c.bf16 %v2634_v10, %v2631_v7 }
 0x1e6   : > { %v2635_v13 = vpop.f32.mrb[48].mxu0  ;;  %3040 = vmatmul.mubr.bf16.gmra.mrb[20].mxu1 %v781_v12 }
 0x1e7   : > { %v2636_v14 = vpop.f32.mrb[49].mxu0 }
 0x1e8   : > { %v2637_v15 = vadd.f32 %v2636_v14, %v2635_v13  ;;  %v2638_v16 = vpop.f32.mrb[50].mxu0 }
 0x1e9   : > { %v2639_v21 = vpop.f32.mrb[51].mxu0 }
 0x1ea   : > { %v2640_v22 = vadd.f32 %v2639_v21, %v2638_v16 }
 0x1ec   : > { %v782_v23 = vpack.c.bf16 %v2640_v22, %v2637_v15 }
 0x1ee   : > { %v2641_v25 = vpop.f32.mrb[52].mxu0  ;;  %3043 = vmatprep.mubr.bf16.mxu1 %v782_v23 }
 0x1ef   : > { %v2642_v43 = vpop.f32.mrb[53].mxu0 }
 0x1f0   : > { %v2643_v46 = vadd.f32 %v2642_v43, %v2641_v25  ;;  %v2644_v47 = vpop.f32.mrb[54].mxu0 }
 0x1f1   : > { %v2645_v50 = vpop.f32.mrb[55].mxu0 }
 0x1f2   : > { %v2646_v56 = vadd.f32 %v2645_v50, %v2644_v47 }
 0x1f4   : > { %v783_v57 = vpack.c.bf16 %v2646_v56, %v2643_v46 }
 0x1f6   : > { %v2647_v58 = vpop.f32.mrb[56].mxu0  ;;  %3044 = vmatmul.mubr.bf16.gmra.mrb[24].mxu1 %v783_v57 }
 0x1f7   : > { %v2648_v59 = vpop.f32.mrb[57].mxu0 }
 0x1f8   : > { %v2649_v60 = vadd.f32 %v2648_v59, %v2647_v58  ;;  %v2650_v61 = vpop.f32.mrb[58].mxu0 }
 0x1f9   : > { %v2651_v62 = vpop.f32.mrb[59].mxu0 }
 0x1fa   : > { %v2652_v63 = vadd.f32 %v2651_v62, %v2650_v61 }
 0x1fc   : > { %v784_v0 = vpack.c.bf16 %v2652_v63, %v2649_v60 }
 0x1fe   : > { %v2653_v1 = vpop.f32.mrb[60].mxu0  ;;  %3047 = vmatprep.mubr.bf16.mxu1 %v784_v0 }
 0x1ff   : > { %v2654_v2 = vpop.f32.mrb[61].mxu0 }
 0x200   : > { %v2655_v3 = vadd.f32 %v2654_v2, %v2653_v1  ;;  %v2656_v4 = vpop.f32.mrb[62].mxu0 }
 0x201   : > { %v2657_v5 = vpop.f32.mrb[63].mxu0 }
 0x202   : > { %v2658_v6 = vadd.f32 %v2657_v5, %v2656_v4 }
 0x204   : > { %v785_v7 = vpack.c.bf16 %v2658_v6, %v2655_v3 }
 0x206   : > { %3048 = vmatmul.mubr.bf16.gmra.mrb[28].mxu1 %v785_v7 }
 0x207   : > { %1098 = vmatprep.mubr.bf16.mxu1 %v3869_v11 }
 0x269   : > { %v3021_v9 = vpop.f32.mrb[0].mxu1 }
 0x26a   : > { %v900_v10 = vadd.f32 %v3021_v9, %v3974_v8  ;;  %v891_v12 = vpop.f32.mrb[1].mxu1 }
 0x26b   : > { %v892_v13 = vadd.f32 %v3974_v8, %v891_v12  ;;  %v3022_v14 = vpop.f32.mrb[2].mxu1 }
 0x26c   : > { %v903_v15 = vadd.f32 %v3022_v14, %v3974_v8  ;;  %v894_v16 = vpop.f32.mrb[3].mxu1  ;;  %v1020_v22 = vmax.f32 %v900_v10, 0.0 }
 0x26d   : > { %v895_v21 = vadd.f32 %v3974_v8, %v894_v16  ;;  %v1018_v11 = vmax.f32 %v892_v13, 0.0 }
 0x26e   : > { %v1021_v23 = vmax.f32 %v903_v15, 0.0 }
 0x26f   : > { %v1019_v25 = vmax.f32 %v895_v21, 0.0 }
 0x270   : > { %v1051_v43 = vpack.c.bf16 %v1021_v23, %v1020_v22 }
 0x271   : > { %v1050_v46 = vpack.c.bf16 %v1019_v25, %v1018_v11 }
 0x279   : > { %v3025_v47 = vpop.f32.mrb[4].mxu1 }
 0x27a   : > { %v916_v50 = vadd.f32 %v3025_v47, %v3974_v8  ;;  %v907_v56 = vpop.f32.mrb[5].mxu1 }
 0x27b   : > { %v908_v57 = vadd.f32 %v3974_v8, %v907_v56  ;;  %v3026_v58 = vpop.f32.mrb[6].mxu1 }
 0x27c   : > { %v919_v59 = vadd.f32 %v3026_v58, %v3974_v8  ;;  %v910_v60 = vpop.f32.mrb[7].mxu1  ;;  %v1024_v62 = vmax.f32 %v916_v50, 0.0 }
 0x27d   : > { %v911_v61 = vadd.f32 %v3974_v8, %v910_v60  ;;  %v1022_v0 = vmax.f32 %v908_v57, 0.0 }
 0x27e   : > { %v1025_v63 = vmax.f32 %v919_v59, 0.0 }
 0x27f   : > { %v1023_v1 = vmax.f32 %v911_v61, 0.0 }
 0x280   : > { %v3984_v2 = vpack.c.bf16 %v1025_v63, %v1024_v62 }
 0x281   : > { %v1052_v3 = vpack.c.bf16 %v1023_v1, %v1022_v0 }
 0x289   : > { %v3029_v4 = vpop.f32.mrb[8].mxu1 }
 0x28a   : > { %v932_v5 = vadd.f32 %v3029_v4, %v3974_v8  ;;  %v923_v6 = vpop.f32.mrb[9].mxu1 }
 0x28b   : > { %v924_v7 = vadd.f32 %v3974_v8, %v923_v6  ;;  %v3030_v9 = vpop.f32.mrb[10].mxu1 }
 0x28c   : > { %v935_v10 = vadd.f32 %v3030_v9, %v3974_v8  ;;  %v926_v12 = vpop.f32.mrb[11].mxu1  ;;  %v1028_v14 = vmax.f32 %v932_v5, 0.0 }
 0x28d   : > { %v927_v13 = vadd.f32 %v3974_v8, %v926_v12  ;;  %v1026_v16 = vmax.f32 %v924_v7, 0.0 }
 0x28e   : > { %v1029_v15 = vmax.f32 %v935_v10, 0.0 }
 0x28f   : > { %v1027_v21 = vmax.f32 %v927_v13, 0.0 }
 0x290   : > { %v3990_v22 = vpack.c.bf16 %v1029_v15, %v1028_v14 }
 0x291   : > { %v3992_v23 = vpack.c.bf16 %v1027_v21, %v1026_v16 }
 0x299   : > { %v3033_v11 = vpop.f32.mrb[12].mxu1 }
 0x29a   : > { %v948_v25 = vadd.f32 %v3033_v11, %v3974_v8  ;;  %v939_v47 = vpop.f32.mrb[13].mxu1 }
 0x29b   : > { %v940_v50 = vadd.f32 %v3974_v8, %v939_v47  ;;  %v3034_v56 = vpop.f32.mrb[14].mxu1 }
 0x29c   : > { %v951_v57 = vadd.f32 %v3034_v56, %v3974_v8  ;;  %v942_v58 = vpop.f32.mrb[15].mxu1  ;;  %v1032_v60 = vmax.f32 %v948_v25, 0.0 }
 0x29d   : > { %v943_v59 = vadd.f32 %v3974_v8, %v942_v58  ;;  %v1030_v62 = vmax.f32 %v940_v50, 0.0 }
 0x29e   : > { %v1033_v61 = vmax.f32 %v951_v57, 0.0 }
 0x29f   : > { %v1031_v63 = vmax.f32 %v943_v59, 0.0 }
 0x2a0   : > { %v3998_v0 = vpack.c.bf16 %v1033_v61, %v1032_v60 }
 0x2a1   : > { %v4000_v1 = vpack.c.bf16 %v1031_v63, %v1030_v62 }
 0x2a9   : > { %v3037_v4 = vpop.f32.mrb[16].mxu1 }
 0x2aa   : > { %v964_v5 = vadd.f32 %v3037_v4, %v3974_v8  ;;  %v955_v6 = vpop.f32.mrb[17].mxu1 }
 0x2ab   : > { %v956_v7 = vadd.f32 %v3974_v8, %v955_v6  ;;  %v3038_v9 = vpop.f32.mrb[18].mxu1 }
 0x2ac   : > { %v967_v10 = vadd.f32 %v3038_v9, %v3974_v8  ;;  %v958_v12 = vpop.f32.mrb[19].mxu1  ;;  %v1036_v14 = vmax.f32 %v964_v5, 0.0 }
 0x2ad   : > { %v959_v13 = vadd.f32 %v3974_v8, %v958_v12  ;;  %v1034_v16 = vmax.f32 %v956_v7, 0.0 }
 0x2ae   : > { %v1037_v15 = vmax.f32 %v967_v10, 0.0 }
 0x2af   : > { %v1035_v21 = vmax.f32 %v959_v13, 0.0 }
 0x2b0   : > { %v1059_v11 = vpack.c.bf16 %v1037_v15, %v1036_v14 }
 0x2b1   : > { %v1058_v25 = vpack.c.bf16 %v1035_v21, %v1034_v16 }
 0x2b3   : > { %2683 = vmatprep.subr.bf16.mxu1 %v1058_v25 }
 0x2b4   : > { %2684 = vmatpush3.bf16.msra.mxu1 %v1050_v46 }
 0x2b5   : > { %2685 = vmatprep.subr.bf16.mxu1 %v1059_v11 }
 0x2b8   : > { %2686 = vmatpush3.bf16.msra.mxu1 %v1051_v43 }
 0x2b9   : > { %v3041_v47 = vpop.f32.mrb[20].mxu1 }
 0x2ba   : > { %v980_v50 = vadd.f32 %v3041_v47, %v3974_v8  ;;  %v971_v56 = vpop.f32.mrb[21].mxu1 }
 0x2bb   : > { %v972_v57 = vadd.f32 %v3974_v8, %v971_v56  ;;  %v3042_v58 = vpop.f32.mrb[22].mxu1 }
 0x2bc   : > { %v983_v59 = vadd.f32 %v3042_v58, %v3974_v8  ;;  %v974_v60 = vpop.f32.mrb[23].mxu1  ;;  %v1040_v62 = vmax.f32 %v980_v50, 0.0 }
 0x2bd   : > { %v975_v61 = vadd.f32 %v3974_v8, %v974_v60  ;;  %v1038_v4 = vmax.f32 %v972_v57, 0.0 }
 0x2be   : > { %v1041_v63 = vmax.f32 %v983_v59, 0.0 }
 0x2bf   : > { %v1039_v5 = vmax.f32 %v975_v61, 0.0 }
 0x2c0   : > { %v1061_v6 = vpack.c.bf16 %v1041_v63, %v1040_v62 }
 0x2c1   : > { %v1060_v46 = vpack.c.bf16 %v1039_v5, %v1038_v4 }
 0x2c3   : > { %2687 = vmatprep.subr.bf16.mxu1 %v1060_v46  ;;  %v3343_v46 = vld [vmem:[#allocation8 + $0x48] sm:$0xff]  }
 0x2c4   : > { %2688 = vmatpush3.bf16.msra.mxu1 %v1052_v3 }
 0x2c5   : > { %2689 = vmatprep.subr.bf16.mxu1 %v1061_v6 }
 0x2c8   : > { %2690 = vmatpush3.bf16.msra.mxu1 %v3984_v2 }
 0x2c9   : > { %v3045_v43 = vpop.f32.mrb[24].mxu1 }
 0x2ca   : > { %v996_v7 = vadd.f32 %v3045_v43, %v3974_v8  ;;  %v987_v9 = vpop.f32.mrb[25].mxu1  ;;  %v3344_v43 = vld [vmem:[#allocation8 + $0x50] sm:$0xff]  }
 0x2cb   : > { %v988_v10 = vadd.f32 %v3974_v8, %v987_v9  ;;  %v3046_v12 = vpop.f32.mrb[26].mxu1 }
 0x2cc   : > { %v999_v13 = vadd.f32 %v3046_v12, %v3974_v8  ;;  %v990_v14 = vpop.f32.mrb[27].mxu1  ;;  %v1044_v16 = vmax.f32 %v996_v7, 0.0 }
 0x2cd   : > { %v991_v15 = vadd.f32 %v3974_v8, %v990_v14  ;;  %v1042_v11 = vmax.f32 %v988_v10, 0.0 }
 0x2ce   : > { %v1045_v21 = vmax.f32 %v999_v13, 0.0 }
 0x2cf   : > { %v1043_v25 = vmax.f32 %v991_v15, 0.0 }
 0x2d0   : > { %v1063_v3 = vpack.c.bf16 %v1045_v21, %v1044_v16 }
 0x2d1   : > { %v1062_v47 = vpack.c.bf16 %v1043_v25, %v1042_v11 }
 0x2d3   : > { %2691 = vmatprep.subr.bf16.mxu1 %v1062_v47 }
 0x2d4   : > { %2692 = vmatpush3.bf16.msra.mxu1 %v3992_v23 }
 0x2d5   : > { %2693 = vmatprep.subr.bf16.mxu1 %v1063_v3 }
 0x2d8   : > { %2694 = vmatpush3.bf16.msra.mxu1 %v3990_v22  ;;  %v3342_v22 = vld [vmem:[#allocation8 + $0x40] sm:$0xff]  }
 0x2d9   : > { %v3049_v2 = vpop.f32.mrb[28].mxu1  ;;  %3051 = vmatprep.subr.bf16.mxu0 %v3342_v22 }
 0x2da   : > { %v1012_v50 = vadd.f32 %v3049_v2, %v3974_v8  ;;  %v1003_v56 = vpop.f32.mrb[29].mxu1  ;;  %3052 = vmatpush3.bf16.msra.mxu0 %v3342_v22 }
 0x2db   : > { %v1004_v57 = vadd.f32 %v3974_v8, %v1003_v56  ;;  %v3050_v58 = vpop.f32.mrb[30].mxu1  ;;  %3053 = vmatprep.subr.bf16.mxu0 %v3343_v46 }
 0x2dc   : > { %v1015_v59 = vadd.f32 %v3050_v58, %v3974_v8  ;;  %v1006_v60 = vpop.f32.mrb[31].mxu1  ;;  %v1048_v62 = vmax.f32 %v1012_v50, 0.0 }
 0x2dd   : > { %v1007_v61 = vadd.f32 %v3974_v8, %v1006_v60  ;;  %v1046_v4 = vmax.f32 %v1004_v57, 0.0  ;;  %v3345_v8 = vld [vmem:[#allocation8 + $0x58] sm:$0xff]  }
 0x2de   : > { %v1049_v63 = vmax.f32 %v1015_v59, 0.0  ;;  %3054 = vmatpush3.bf16.msra.mxu0 %v3343_v46 }
 0x2df   : > { %v1047_v5 = vmax.f32 %v1007_v61, 0.0  ;;  %3055 = vmatprep.subr.bf16.mxu0 %v3344_v43 }
 0x2e0   : > { %v1065_v23 = vpack.c.bf16 %v1049_v63, %v1048_v62 }
 0x2e1   : > { %v1064_v6 = vpack.c.bf16 %v1047_v5, %v1046_v4 }
 0x2e2   : > { %3056 = vmatpush3.bf16.msra.mxu0 %v3344_v43 }
 0x2e3   : > { %2695 = vmatprep.subr.bf16.mxu1 %v1064_v6  ;;  %3057 = vmatprep.subr.bf16.mxu0 %v3345_v8 }
 0x2e4   : > { %2696 = vmatpush3.bf16.msra.mxu1 %v4000_v1 }
 0x2e5   : > { %2697 = vmatprep.subr.bf16.mxu1 %v1065_v23 }
 0x2e6   : > { %3058 = vmatpush3.bf16.msra.mxu0 %v3345_v8 }
 0x2e8   : > { %2698 = vmatpush3.bf16.msra.mxu1 %v3998_v0 }
 0x2eb   : > { %1099 = vmatmul.mubr.bf16.vlgmr.msra.gmra.mrb[32].mxu1 %v3877_v17  ;;  %v3346_v17 = vld [vmem:[#allocation8 + $0x60] sm:$0xff]  }
 0x2ec   : > { %1106 = vmatprep.mubr.bf16.mxu1 %v3879_v18  ;;  %3059 = vmatprep.subr.bf16.mxu0 %v3346_v17  ;;  %v3347_v18 = vld [vmem:[#allocation8 + $0x68] sm:$0xff]  }
 0x2ed   : > { %3060 = vmatpush3.bf16.msra.mxu0 %v3346_v17 }
 0x2ee   : > { %3061 = vmatprep.subr.bf16.mxu0 %v3347_v18 }
 0x2f1   : > { %3062 = vmatpush3.bf16.msra.mxu0 %v3347_v18 }
 0x2f3   : > { %1107 = vmatmul.mubr.bf16.gmra.mrb[36].mxu1 %v3883_v19  ;;  %v3348_v19 = vld [vmem:[#allocation8 + $0x70] sm:$0xff]  }
 0x2f4   : > { %1114 = vmatprep.mubr.bf16.mxu1 %v3885_v20  ;;  %3063 = vmatprep.subr.bf16.mxu0 %v3348_v19  ;;  %v3349_v20 = vld [vmem:[#allocation8 + $0x78] sm:$0xff]  }
 0x2f5   : > { %3064 = vmatpush3.bf16.msra.mxu0 %v3348_v19 }
 0x2f6   : > { %3065 = vmatprep.subr.bf16.mxu0 %v3349_v20 }
 0x2f9   : > { %3066 = vmatpush3.bf16.msra.mxu0 %v3349_v20 }
 0x2fb   : > { %1115 = vmatmul.mubr.bf16.gmra.mrb[40].mxu1 %v3889_v24 }
 0x2fc   : > { %1122 = vmatprep.mubr.bf16.mxu1 %v3891_v26 }
 0x303   : > { %1123 = vmatmul.mubr.bf16.gmra.mrb[44].mxu1 %v3895_v27 }
 0x304   : > { %1130 = vmatprep.mubr.bf16.mxu1 %v3897_v28 }
 0x30b   : > { %1131 = vmatmul.mubr.bf16.gmra.mrb[48].mxu1 %v3901_v29 }
 0x30c   : > { %1138 = vmatprep.mubr.bf16.mxu1 %v3903_v30 }
 0x313   : > { %1139 = vmatmul.mubr.bf16.gmra.mrb[52].mxu1 %v3907_v31 }
 0x314   : > { %1146 = vmatprep.mubr.bf16.mxu1 %v3909_v32 }
 0x31b   : > { %1147 = vmatmul.mubr.bf16.gmra.mrb[56].mxu1 %v3913_v33 }
 0x31c   : > { %1154 = vmatprep.mubr.bf16.mxu1 %v3915_v34 }
 0x323   : > { %1155 = vmatmul.mubr.bf16.gmra.mrb[60].mxu1 %v3919_v35 }
 0x324   : > { %1162 = vmatprep.mubr.bf16.mxu1 %v3921_v36 }
 0x32b   : > { %1163 = vmatmul.mubr.bf16.gmra.mrb[64].mxu1 %v3925_v37 }
 0x32c   : > { %1170 = vmatprep.mubr.bf16.mxu1 %v3927_v38 }
 0x333   : > { %1171 = vmatmul.mubr.bf16.gmra.mrb[68].mxu1 %v3931_v39 }
 0x334   : > { %1178 = vmatprep.mubr.bf16.mxu1 %v3933_v40 }
 0x33b   : > { %1179 = vmatmul.mubr.bf16.gmra.mrb[72].mxu1 %v3937_v41 }
 0x33c   : > { %1186 = vmatprep.mubr.bf16.mxu1 %v3939_v42 }
 0x343   : > { %1187 = vmatmul.mubr.bf16.gmra.mrb[76].mxu1 %v3943_v44 }
 0x344   : > { %1194 = vmatprep.mubr.bf16.mxu1 %v3945_v45 }
 0x34b   : > { %1195 = vmatmul.mubr.bf16.gmra.mrb[80].mxu1 %v3949_v48 }
 0x34c   : > { %1202 = vmatprep.mubr.bf16.mxu1 %v3951_v49 }
 0x353   : > { %1203 = vmatmul.mubr.bf16.gmra.mrb[84].mxu1 %v3955_v51 }
 0x354   : > { %1210 = vmatprep.mubr.bf16.mxu1 %v3957_v52 }
 0x35b   : > { %1211 = vmatmul.mubr.bf16.gmra.mrb[88].mxu1 %v3961_v53 }
 0x35c   : > { %1218 = vmatprep.mubr.bf16.mxu1 %v3963_v54 }
 0x363   : > { %1219 = vmatmul.mubr.bf16.gmra.mrb[92].mxu1 %v3967_v55 }
 0x3be   : > { %v2699_v24 = vpop.f32.mrb[32].mxu1 }
 0x3bf   : > { %v2700_v26 = vpop.f32.mrb[33].mxu1 }
 0x3c0   : > { %v2701_v27 = vadd.f32 %v2700_v26, %v2699_v24  ;;  %v2702_v28 = vpop.f32.mrb[34].mxu1 }
 0x3c1   : > { %v2703_v29 = vpop.f32.mrb[35].mxu1 }
 0x3c2   : > { %v2704_v30 = vadd.f32 %v2703_v29, %v2702_v28 }
 0x3c4   : > { %v1227_v31 = vpack.c.bf16 %v2704_v30, %v2701_v27 }
 0x3c6   : > { %v2705_v32 = vpop.f32.mrb[36].mxu1  ;;  %3067 = vmatprep.mubr.bf16.mxu0 %v1227_v31 }
 0x3c7   : > { %v2706_v33 = vpop.f32.mrb[37].mxu1 }
 0x3c8   : > { %v2707_v34 = vadd.f32 %v2706_v33, %v2705_v32  ;;  %v2708_v35 = vpop.f32.mrb[38].mxu1 }
 0x3c9   : > { %v2709_v36 = vpop.f32.mrb[39].mxu1 }
 0x3ca   : > { %v2710_v37 = vadd.f32 %v2709_v36, %v2708_v35 }
 0x3cc   : > { %v1228_v38 = vpack.c.bf16 %v2710_v37, %v2707_v34 }
 0x3ce   : > { %v2711_v39 = vpop.f32.mrb[40].mxu1  ;;  %3068 = vmatmul.mubr.bf16.vlgmr.msra.gmra.mrb[64].mxu0 %v1228_v38 }
 0x3cf   : > { %v2712_v40 = vpop.f32.mrb[41].mxu1 }
 0x3d0   : > { %v2713_v41 = vadd.f32 %v2712_v40, %v2711_v39  ;;  %v2714_v42 = vpop.f32.mrb[42].mxu1 }
 0x3d1   : > { %v2715_v44 = vpop.f32.mrb[43].mxu1 }
 0x3d2   : > { %v2716_v45 = vadd.f32 %v2715_v44, %v2714_v42 }
 0x3d4   : > { %v1229_v48 = vpack.c.bf16 %v2716_v45, %v2713_v41 }
 0x3d6   : > { %v2717_v49 = vpop.f32.mrb[44].mxu1  ;;  %3071 = vmatprep.mubr.bf16.mxu0 %v1229_v48 }
 0x3d7   : > { %v2718_v51 = vpop.f32.mrb[45].mxu1 }
 0x3d8   : > { %v2719_v52 = vadd.f32 %v2718_v51, %v2717_v49  ;;  %v2720_v53 = vpop.f32.mrb[46].mxu1 }
 0x3d9   : > { %v2721_v54 = vpop.f32.mrb[47].mxu1 }
 0x3da   : > { %v2722_v55 = vadd.f32 %v2721_v54, %v2720_v53 }
 0x3dc   : > { %v1230_v0 = vpack.c.bf16 %v2722_v55, %v2719_v52 }
 0x3de   : > { %v2723_v1 = vpop.f32.mrb[48].mxu1  ;;  %3072 = vmatmul.mubr.bf16.gmra.mrb[68].mxu0 %v1230_v0 }
 0x3df   : > { %v2724_v7 = vpop.f32.mrb[49].mxu1 }
 0x3e0   : > { %v2725_v9 = vadd.f32 %v2724_v7, %v2723_v1  ;;  %v2726_v10 = vpop.f32.mrb[50].mxu1 }
 0x3e1   : > { %v2727_v12 = vpop.f32.mrb[51].mxu1 }
 0x3e2   : > { %v2728_v13 = vadd.f32 %v2727_v12, %v2726_v10 }
 0x3e4   : > { %v1231_v14 = vpack.c.bf16 %v2728_v13, %v2725_v9 }
 0x3e6   : > { %v2729_v15 = vpop.f32.mrb[52].mxu1  ;;  %3075 = vmatprep.mubr.bf16.mxu0 %v1231_v14 }
 0x3e7   : > { %v2730_v16 = vpop.f32.mrb[53].mxu1 }
 0x3e8   : > { %v2731_v21 = vadd.f32 %v2730_v16, %v2729_v15  ;;  %v2732_v11 = vpop.f32.mrb[54].mxu1 }
 0x3e9   : > { %v2733_v25 = vpop.f32.mrb[55].mxu1 }
 0x3ea   : > { %v2734_v3 = vadd.f32 %v2733_v25, %v2732_v11 }
 0x3ec   : > { %v1232_v47 = vpack.c.bf16 %v2734_v3, %v2731_v21 }
 0x3ee   : > { %v2735_v2 = vpop.f32.mrb[56].mxu1  ;;  %3076 = vmatmul.mubr.bf16.gmra.mrb[72].mxu0 %v1232_v47 }
 0x3ef   : > { %v2736_v50 = vpop.f32.mrb[57].mxu1 }
 0x3f0   : > { %v2737_v56 = vadd.f32 %v2736_v50, %v2735_v2  ;;  %v2738_v57 = vpop.f32.mrb[58].mxu1 }
 0x3f1   : > { %v2739_v58 = vpop.f32.mrb[59].mxu1 }
 0x3f2   : > { %v2740_v59 = vadd.f32 %v2739_v58, %v2738_v57 }
 0x3f4   : > { %v1233_v60 = vpack.c.bf16 %v2740_v59, %v2737_v56 }
 0x3f6   : > { %v2741_v61 = vpop.f32.mrb[60].mxu1  ;;  %3079 = vmatprep.mubr.bf16.mxu0 %v1233_v60  ;;  %v3380_v60 = vld [vmem:[#allocation2 + $0x4] ss:$8 sps:$4 sm:$0xff]  }
 0x3f7   : > { %v2742_v62 = vpop.f32.mrb[61].mxu1 }
 0x3f8   : > { %v2743_v63 = vadd.f32 %v2742_v62, %v2741_v61  ;;  %v2744_v4 = vpop.f32.mrb[62].mxu1  ;;  %v4057_v61 = vld [vmem:[%s4219_s4 + $0x1] ss:$0 sm:$0xff] }
 0x3f9   : > { %v2745_v5 = vpop.f32.mrb[63].mxu1 }
 0x3fa   : > { %v2746_v23 = vadd.f32 %v2745_v5, %v2744_v4 }
 0x3fc   : > { %v1234_v6 = vpack.c.bf16 %v2746_v23, %v2743_v63 }
 0x3fe   : > { %v2747_v22 = vpop.f32.mrb[64].mxu1  ;;  %3080 = vmatmul.mubr.bf16.gmra.mrb[76].mxu0 %v1234_v6 }
 0x3ff   : > { %v2748_v46 = vpop.f32.mrb[65].mxu1 }
 0x400   : > { %v2749_v43 = vadd.f32 %v2748_v46, %v2747_v22  ;;  %v2750_v8 = vpop.f32.mrb[66].mxu1 }
 0x401   : > { %v2751_v17 = vpop.f32.mrb[67].mxu1 }
 0x402   : > { %v2752_v18 = vadd.f32 %v2751_v17, %v2750_v8 }
 0x404   : > { %v1235_v19 = vpack.c.bf16 %v2752_v18, %v2749_v43 }
 0x406   : > { %v2753_v20 = vpop.f32.mrb[68].mxu1  ;;  %3083 = vmatprep.mubr.bf16.mxu0 %v1235_v19 }
 0x407   : > { %v2754_v24 = vpop.f32.mrb[69].mxu1 }
 0x408   : > { %v2755_v26 = vadd.f32 %v2754_v24, %v2753_v20  ;;  %v2756_v27 = vpop.f32.mrb[70].mxu1 }
 0x409   : > { %v2757_v28 = vpop.f32.mrb[71].mxu1 }
 0x40a   : > { %v2758_v29 = vadd.f32 %v2757_v28, %v2756_v27 }
 0x40c   : > { %v1236_v30 = vpack.c.bf16 %v2758_v29, %v2755_v26 }
 0x40e   : > { %v2759_v31 = vpop.f32.mrb[72].mxu1  ;;  %3084 = vmatmul.mubr.bf16.gmra.mrb[80].mxu0 %v1236_v30 }
 0x40f   : > { %v2760_v32 = vpop.f32.mrb[73].mxu1 }
 0x410   : > { %v2761_v33 = vadd.f32 %v2760_v32, %v2759_v31  ;;  %v2762_v34 = vpop.f32.mrb[74].mxu1 }
 0x411   : > { %v2763_v35 = vpop.f32.mrb[75].mxu1 }
 0x412   : > { %v2764_v36 = vadd.f32 %v2763_v35, %v2762_v34 }
 0x414   : > { %v1237_v37 = vpack.c.bf16 %v2764_v36, %v2761_v33 }
 0x416   : > { %v2765_v38 = vpop.f32.mrb[76].mxu1  ;;  %3087 = vmatprep.mubr.bf16.mxu0 %v1237_v37 }
 0x417   : > { %v2766_v39 = vpop.f32.mrb[77].mxu1 }
 0x418   : > { %v2767_v40 = vadd.f32 %v2766_v39, %v2765_v38  ;;  %v2768_v41 = vpop.f32.mrb[78].mxu1 }
 0x419   : > { %v2769_v42 = vpop.f32.mrb[79].mxu1 }
 0x41a   : > { %v2770_v44 = vadd.f32 %v2769_v42, %v2768_v41 }
 0x41c   : > { %v1238_v45 = vpack.c.bf16 %v2770_v44, %v2767_v40 }
 0x41e   : > { %v2771_v48 = vpop.f32.mrb[80].mxu1  ;;  %3088 = vmatmul.mubr.bf16.gmra.mrb[84].mxu0 %v1238_v45 }
 0x41f   : > { %v2772_v49 = vpop.f32.mrb[81].mxu1 }
 0x420   : > { %v2773_v51 = vadd.f32 %v2772_v49, %v2771_v48  ;;  %v2774_v52 = vpop.f32.mrb[82].mxu1 }
 0x421   : > { %v2775_v53 = vpop.f32.mrb[83].mxu1 }
 0x422   : > { %v2776_v54 = vadd.f32 %v2775_v53, %v2774_v52 }
 0x424   : > { %v1239_v55 = vpack.c.bf16 %v2776_v54, %v2773_v51 }
 0x426   : > { %v2777_v0 = vpop.f32.mrb[84].mxu1  ;;  %3091 = vmatprep.mubr.bf16.mxu0 %v1239_v55 }
 0x427   : > { %v2778_v1 = vpop.f32.mrb[85].mxu1 }
 0x428   : > { %v2779_v7 = vadd.f32 %v2778_v1, %v2777_v0  ;;  %v2780_v9 = vpop.f32.mrb[86].mxu1 }
 0x429   : > { %v2781_v10 = vpop.f32.mrb[87].mxu1 }
 0x42a   : > { %v2782_v12 = vadd.f32 %v2781_v10, %v2780_v9 }
 0x42c   : > { %v1240_v13 = vpack.c.bf16 %v2782_v12, %v2779_v7 }
 0x42e   : > { %v2783_v14 = vpop.f32.mrb[88].mxu1  ;;  %3092 = vmatmul.mubr.bf16.gmra.mrb[88].mxu0 %v1240_v13 }
 0x42f   : > { %v2784_v15 = vpop.f32.mrb[89].mxu1 }
 0x430   : > { %v2785_v16 = vadd.f32 %v2784_v15, %v2783_v14  ;;  %v2786_v21 = vpop.f32.mrb[90].mxu1 }
 0x431   : > { %v2787_v11 = vpop.f32.mrb[91].mxu1 }
 0x432   : > { %v2788_v25 = vadd.f32 %v2787_v11, %v2786_v21 }
 0x434   : > { %v1241_v3 = vpack.c.bf16 %v2788_v25, %v2785_v16 }
 0x436   : > { %v2789_v47 = vpop.f32.mrb[92].mxu1  ;;  %3095 = vmatprep.mubr.bf16.mxu0 %v1241_v3 }
 0x437   : > { %v2790_v2 = vpop.f32.mrb[93].mxu1 }
 0x438   : > { %v2791_v50 = vadd.f32 %v2790_v2, %v2789_v47  ;;  %v2792_v56 = vpop.f32.mrb[94].mxu1 }
 0x439   : > { %v2793_v57 = vpop.f32.mrb[95].mxu1 }
 0x43a   : > { %v2794_v58 = vadd.f32 %v2793_v57, %v2792_v56 }
 0x43c   : > { %v1242_v59 = vpack.c.bf16 %v2794_v58, %v2791_v50 }
 0x43e   : > { %3096 = vmatmul.mubr.bf16.gmra.mrb[92].mxu0 %v1242_v59 }
 0x43f   : > { %1557 = vmatprep.mubr.bf16.mxu0 %v3380_v60 }
 0x4a1   : > { %v3069_v62 = vpop.f32.mrb[64].mxu0 }
 0x4a2   : > { %v1359_v63 = vadd.f32 %v3069_v62, %v4057_v61  ;;  %v1350_v4 = vpop.f32.mrb[65].mxu0 }
 0x4a3   : > { %v1351_v5 = vadd.f32 %v4057_v61, %v1350_v4  ;;  %v3070_v23 = vpop.f32.mrb[66].mxu0 }
 0x4a4   : > { %v1362_v6 = vadd.f32 %v3070_v23, %v4057_v61  ;;  %v1353_v22 = vpop.f32.mrb[67].mxu0  ;;  %v1479_v43 = vmax.f32 %v1359_v63, 0.0 }
 0x4a5   : > { %v1354_v46 = vadd.f32 %v4057_v61, %v1353_v22  ;;  %v1477_v17 = vmax.f32 %v1351_v5, 0.0 }
 0x4a6   : > { %v1480_v8 = vmax.f32 %v1362_v6, 0.0 }
 0x4a7   : > { %v1478_v18 = vmax.f32 %v1354_v46, 0.0 }
 0x4a8   : > { %v1510_v19 = vpack.c.bf16 %v1480_v8, %v1479_v43 }
 0x4a9   : > { %v1509_v20 = vpack.c.bf16 %v1478_v18, %v1477_v17 }
 0x4b1   : > { %v3073_v24 = vpop.f32.mrb[68].mxu0 }
 0x4b2   : > { %v1375_v26 = vadd.f32 %v3073_v24, %v4057_v61  ;;  %v1366_v27 = vpop.f32.mrb[69].mxu0 }
 0x4b3   : > { %v1367_v28 = vadd.f32 %v4057_v61, %v1366_v27  ;;  %v3074_v29 = vpop.f32.mrb[70].mxu0 }
 0x4b4   : > { %v1378_v30 = vadd.f32 %v3074_v29, %v4057_v61  ;;  %v1369_v31 = vpop.f32.mrb[71].mxu0  ;;  %v1483_v33 = vmax.f32 %v1375_v26, 0.0 }
 0x4b5   : > { %v1370_v32 = vadd.f32 %v4057_v61, %v1369_v31  ;;  %v1481_v35 = vmax.f32 %v1367_v28, 0.0 }
 0x4b6   : > { %v1484_v34 = vmax.f32 %v1378_v30, 0.0 }
 0x4b7   : > { %v1482_v36 = vmax.f32 %v1370_v32, 0.0 }
 0x4b8   : > { %v4067_v37 = vpack.c.bf16 %v1484_v34, %v1483_v33 }
 0x4b9   : > { %v1511_v38 = vpack.c.bf16 %v1482_v36, %v1481_v35 }
 0x4c1   : > { %v3077_v39 = vpop.f32.mrb[72].mxu0 }
 0x4c2   : > { %v1391_v40 = vadd.f32 %v3077_v39, %v4057_v61  ;;  %v1382_v41 = vpop.f32.mrb[73].mxu0 }
 0x4c3   : > { %v1383_v42 = vadd.f32 %v4057_v61, %v1382_v41  ;;  %v3078_v44 = vpop.f32.mrb[74].mxu0 }
 0x4c4   : > { %v1394_v45 = vadd.f32 %v3078_v44, %v4057_v61  ;;  %v1385_v48 = vpop.f32.mrb[75].mxu0  ;;  %v1487_v51 = vmax.f32 %v1391_v40, 0.0 }
 0x4c5   : > { %v1386_v49 = vadd.f32 %v4057_v61, %v1385_v48  ;;  %v1485_v53 = vmax.f32 %v1383_v42, 0.0 }
 0x4c6   : > { %v1488_v52 = vmax.f32 %v1394_v45, 0.0 }
 0x4c7   : > { %v1486_v54 = vmax.f32 %v1386_v49, 0.0 }
 0x4c8   : > { %v4073_v55 = vpack.c.bf16 %v1488_v52, %v1487_v51 }
 0x4c9   : > { %v4075_v0 = vpack.c.bf16 %v1486_v54, %v1485_v53 }
 0x4d1   : > { %v3081_v1 = vpop.f32.mrb[76].mxu0 }
 0x4d2   : > { %v1407_v7 = vadd.f32 %v3081_v1, %v4057_v61  ;;  %v1398_v9 = vpop.f32.mrb[77].mxu0 }
 0x4d3   : > { %v1399_v10 = vadd.f32 %v4057_v61, %v1398_v9  ;;  %v3082_v12 = vpop.f32.mrb[78].mxu0 }
 0x4d4   : > { %v1410_v13 = vadd.f32 %v3082_v12, %v4057_v61  ;;  %v1401_v14 = vpop.f32.mrb[79].mxu0  ;;  %v1491_v16 = vmax.f32 %v1407_v7, 0.0 }
 0x4d5   : > { %v1402_v15 = vadd.f32 %v4057_v61, %v1401_v14  ;;  %v1489_v11 = vmax.f32 %v1399_v10, 0.0 }
 0x4d6   : > { %v1492_v21 = vmax.f32 %v1410_v13, 0.0 }
 0x4d7   : > { %v1490_v25 = vmax.f32 %v1402_v15, 0.0 }
 0x4d8   : > { %v4081_v3 = vpack.c.bf16 %v1492_v21, %v1491_v16  ;;  %v3351_v16 = vld [vmem:[#allocation8 + $0x88] sm:$0xff]   ;;  %v3352_v21 = vld [vmem:[#allocation8 + $0x90] sm:$0xff]  }
 0x4d9   : > { %v4083_v47 = vpack.c.bf16 %v1490_v25, %v1489_v11  ;;  %v3353_v11 = vld [vmem:[#allocation8 + $0x98] sm:$0xff]  }
 0x4da   : > { %v3382_v25 = vld [vmem:[#allocation2 + $0x14] ss:$8 sps:$4 sm:$0xff]  }
 0x4e1   : > { %v3085_v2 = vpop.f32.mrb[80].mxu0 }
 0x4e2   : > { %v1423_v50 = vadd.f32 %v3085_v2, %v4057_v61  ;;  %v1414_v56 = vpop.f32.mrb[81].mxu0  ;;  %v3383_v2 = vld [vmem:[#allocation2 + $0x10] ss:$8 sps:$4 sm:$0xff]  }
 0x4e3   : > { %v1415_v57 = vadd.f32 %v4057_v61, %v1414_v56  ;;  %v3086_v58 = vpop.f32.mrb[82].mxu0  ;;  %v3386_v56 = vld [vmem:[#allocation2 + $0x34] ss:$8 sps:$4 sm:$0xff]  }
 0x4e4   : > { %v1426_v59 = vadd.f32 %v3086_v58, %v4057_v61  ;;  %v1417_v60 = vpop.f32.mrb[83].mxu0  ;;  %v1495_v63 = vmax.f32 %v1423_v50, 0.0  ;;  %v3385_v50 = vld [vmem:[#allocation2 + $0x20] ss:$8 sps:$4 sm:$0xff]  }
 0x4e5   : > { %v1418_v62 = vadd.f32 %v4057_v61, %v1417_v60  ;;  %v1493_v5 = vmax.f32 %v1415_v57, 0.0  ;;  %v3387_v57 = vld [vmem:[#allocation2 + $0x30] ss:$8 sps:$4 sm:$0xff]   ;;  %v3389_v58 = vld [vmem:[#allocation2 + $0x40] ss:$8 sps:$4 sm:$0xff]  }
 0x4e6   : > { %v1496_v4 = vmax.f32 %v1426_v59, 0.0  ;;  %v3390_v59 = vld [vmem:[#allocation2 + $0x54] ss:$8 sps:$4 sm:$0xff]   ;;  %v3391_v60 = vld [vmem:[#allocation2 + $0x50] ss:$8 sps:$4 sm:$0xff]  }
 0x4e7   : > { %v1494_v23 = vmax.f32 %v1418_v62, 0.0  ;;  %v3392_v62 = vld [vmem:[#allocation2 + $0x64] ss:$8 sps:$4 sm:$0xff]  }
 0x4e8   : > { %v1518_v6 = vpack.c.bf16 %v1496_v4, %v1495_v63  ;;  %v3393_v63 = vld [vmem:[#allocation2 + $0x60] ss:$8 sps:$4 sm:$0xff]   ;;  %v3394_v4 = vld [vmem:[#allocation2 + $0x74] ss:$8 sps:$4 sm:$0xff]  }
 0x4e9   : > { %v1517_v22 = vpack.c.bf16 %v1494_v23, %v1493_v5  ;;  %v3395_v5 = vld [vmem:[#allocation2 + $0x70] ss:$8 sps:$4 sm:$0xff]   ;;  %v3396_v23 = vld [vmem:[#allocation2 + $0x84] ss:$8 sps:$4 sm:$0xff]  }
 0x4eb   : > { %2819 = vmatprep.subr.bf16.mxu0 %v1517_v22  ;;  %v3398_v22 = vld [vmem:[#allocation2 + $0x94] ss:$8 sps:$4 sm:$0xff]  }
 0x4ec   : > { %2820 = vmatpush3.bf16.msra.mxu0 %v1509_v20 }
 0x4ed   : > { %2821 = vmatprep.subr.bf16.mxu0 %v1518_v6  ;;  %v3397_v6 = vld [vmem:[#allocation2 + $0x80] ss:$8 sps:$4 sm:$0xff]  }
 0x4f0   : > { %2822 = vmatpush3.bf16.msra.mxu0 %v1510_v19 }
 0x4f1   : > { %v3089_v46 = vpop.f32.mrb[84].mxu0 }
 0x4f2   : > { %v1439_v43 = vadd.f32 %v3089_v46, %v4057_v61  ;;  %v1430_v8 = vpop.f32.mrb[85].mxu0  ;;  %v3399_v46 = vld [vmem:[#allocation2 + $0x90] ss:$8 sps:$4 sm:$0xff]  }
 0x4f3   : > { %v1431_v17 = vadd.f32 %v4057_v61, %v1430_v8  ;;  %v3090_v18 = vpop.f32.mrb[86].mxu0  ;;  %v3401_v8 = vld [vmem:[#allocation2 + $0xa0] ss:$8 sps:$4 sm:$0xff]  }
 0x4f4   : > { %v1442_v24 = vadd.f32 %v3090_v18, %v4057_v61  ;;  %v1433_v26 = vpop.f32.mrb[87].mxu0  ;;  %v1499_v28 = vmax.f32 %v1439_v43, 0.0  ;;  %v3400_v43 = vld [vmem:[#allocation2 + $0xa4] ss:$8 sps:$4 sm:$0xff]  }
 0x4f5   : > { %v1434_v27 = vadd.f32 %v4057_v61, %v1433_v26  ;;  %v1497_v30 = vmax.f32 %v1431_v17, 0.0  ;;  %v3402_v17 = vld [vmem:[#allocation2 + $0xb4] ss:$8 sps:$4 sm:$0xff]   ;;  %v3354_v18 = vld [vmem:[#allocation8 + $0xa0] sm:$0xff]   ;;  %v3403_v26 = vld [vmem:[#allocation2 + $0xb0] ss:$8 sps:$4 sm:$0xff]  }
 0x4f6   : > { %v1500_v29 = vmax.f32 %v1442_v24, 0.0  ;;  %v3355_v24 = vld [vmem:[#allocation8 + $0xa8] sm:$0xff]  }
 0x4f7   : > { %v1498_v31 = vmax.f32 %v1434_v27, 0.0  ;;  %v3404_v27 = vld [vmem:[#allocation2 + $0xc4] ss:$8 sps:$4 sm:$0xff]  }
 0x4f8   : > { %v1520_v32 = vpack.c.bf16 %v1500_v29, %v1499_v28  ;;  %v3356_v28 = vld [vmem:[#allocation8 + $0xb0] sm:$0xff]   ;;  %v3357_v29 = vld [vmem:[#allocation8 + $0xb8] sm:$0xff]  }
 0x4f9   : > { %v1519_v20 = vpack.c.bf16 %v1498_v31, %v1497_v30  ;;  %v3405_v30 = vld [vmem:[#allocation2 + $0xc0] ss:$8 sps:$4 sm:$0xff]   ;;  %v3406_v31 = vld [vmem:[#allocation2 + $0xd4] ss:$8 sps:$4 sm:$0xff]  }
 0x4fb   : > { %2823 = vmatprep.subr.bf16.mxu0 %v1519_v20  ;;  %v3408_v20 = vld [vmem:[#allocation2 + $0xe4] ss:$8 sps:$4 sm:$0xff]  }
 0x4fc   : > { %2824 = vmatpush3.bf16.msra.mxu0 %v1511_v38 }
 0x4fd   : > { %2825 = vmatprep.subr.bf16.mxu0 %v1520_v32  ;;  %v3407_v32 = vld [vmem:[#allocation2 + $0xd0] ss:$8 sps:$4 sm:$0xff]  }
 0x500   : > { %2826 = vmatpush3.bf16.msra.mxu0 %v4067_v37 }
 0x501   : > { %v3093_v19 = vpop.f32.mrb[88].mxu0 }
 0x502   : > { %v1455_v33 = vadd.f32 %v3093_v19, %v4057_v61  ;;  %v1446_v34 = vpop.f32.mrb[89].mxu0  ;;  %v3409_v19 = vld [vmem:[#allocation2 + $0xe0] ss:$8 sps:$4 sm:$0xff]  }
 0x503   : > { %v1447_v35 = vadd.f32 %v4057_v61, %v1446_v34  ;;  %v3094_v36 = vpop.f32.mrb[90].mxu0  ;;  %v3411_v34 = vld [vmem:[#allocation2 + $0xf0] ss:$8 sps:$4 sm:$0xff]  }
 0x504   : > { %v1458_v39 = vadd.f32 %v3094_v36, %v4057_v61  ;;  %v1449_v40 = vpop.f32.mrb[91].mxu0  ;;  %v1503_v42 = vmax.f32 %v1455_v33, 0.0  ;;  %v3410_v33 = vld [vmem:[#allocation2 + $0xf4] ss:$8 sps:$4 sm:$0xff]  }
 0x505   : > { %v1450_v41 = vadd.f32 %v4057_v61, %v1449_v40  ;;  %v1501_v45 = vmax.f32 %v1447_v35, 0.0 }
 0x506   : > { %v1504_v44 = vmax.f32 %v1458_v39, 0.0 }
 0x507   : > { %v1502_v48 = vmax.f32 %v1450_v41, 0.0 }
 0x508   : > { %v1522_v38 = vpack.c.bf16 %v1504_v44, %v1503_v42 }
 0x509   : > { %v1521_v49 = vpack.c.bf16 %v1502_v48, %v1501_v45 }
 0x50b   : > { %2827 = vmatprep.subr.bf16.mxu0 %v1521_v49 }
 0x50c   : > { %2828 = vmatpush3.bf16.msra.mxu0 %v4075_v0 }
 0x50d   : > { %2829 = vmatprep.subr.bf16.mxu0 %v1522_v38 }
 0x510   : > { %2830 = vmatpush3.bf16.msra.mxu0 %v4073_v55  ;;  %v3350_v55 = vld [vmem:[#allocation8 + $0x80] sm:$0xff]  }
 0x511   : > { %v3097_v37 = vpop.f32.mrb[92].mxu0  ;;  %3099 = vmatprep.subr.bf16.mxu1 %v3350_v55 }
 0x512   : > { %v1471_v51 = vadd.f32 %v3097_v37, %v4057_v61  ;;  %v1462_v52 = vpop.f32.mrb[93].mxu0  ;;  %3100 = vmatpush3.bf16.msra.mxu1 %v3350_v55 }
 0x513   : > { %v1463_v53 = vadd.f32 %v4057_v61, %v1462_v52  ;;  %v3098_v54 = vpop.f32.mrb[94].mxu0  ;;  %3101 = vmatprep.subr.bf16.mxu1 %v3351_v16 }
 0x514   : > { %v1474_v1 = vadd.f32 %v3098_v54, %v4057_v61  ;;  %v1465_v7 = vpop.f32.mrb[95].mxu0  ;;  %v1507_v10 = vmax.f32 %v1471_v51, 0.0 }
 0x515   : > { %v1466_v9 = vadd.f32 %v4057_v61, %v1465_v7  ;;  %v1505_v13 = vmax.f32 %v1463_v53, 0.0  ;;  %v3381_v61 = vld [vmem:[#allocation2] ss:$8 sps:$4 sm:$0xff]  }
 0x516   : > { %v1508_v12 = vmax.f32 %v1474_v1, 0.0  ;;  %3102 = vmatpush3.bf16.msra.mxu1 %v3351_v16 }
 0x517   : > { %v1506_v14 = vmax.f32 %v1466_v9, 0.0  ;;  %3103 = vmatprep.subr.bf16.mxu1 %v3352_v21 }
 0x518   : > { %v1524_v0 = vpack.c.bf16 %v1508_v12, %v1507_v10 }
 0x519   : > { %v1523_v15 = vpack.c.bf16 %v1506_v14, %v1505_v13 }
 0x51a   : > { %3104 = vmatpush3.bf16.msra.mxu1 %v3352_v21 }
 0x51b   : > { %2831 = vmatprep.subr.bf16.mxu0 %v1523_v15  ;;  %3105 = vmatprep.subr.bf16.mxu1 %v3353_v11 }
 0x51c   : > { %2832 = vmatpush3.bf16.msra.mxu0 %v4083_v47  ;;  %v3384_v47 = vld [vmem:[#allocation2 + $0x24] ss:$8 sps:$4 sm:$0xff]  }
 0x51d   : > { %2833 = vmatprep.subr.bf16.mxu0 %v1524_v0 }
 0x51e   : > { %3106 = vmatpush3.bf16.msra.mxu1 %v3353_v11 }
 0x51f   : > { %3107 = vmatprep.subr.bf16.mxu1 %v3354_v18 }
 0x520   : > { %2834 = vmatpush3.bf16.msra.mxu0 %v4081_v3  ;;  %v3388_v3 = vld [vmem:[#allocation2 + $0x44] ss:$8 sps:$4 sm:$0xff]  }
 0x522   : > { %3108 = vmatpush3.bf16.msra.mxu1 %v3354_v18 }
 0x523   : > { %1558 = vmatmul.mubr.bf16.vlgmr.msra.gmra.mrb[96].mxu0 %v3381_v61  ;;  %3109 = vmatprep.subr.bf16.mxu1 %v3355_v24 }
 0x524   : > { %1565 = vmatprep.mubr.bf16.mxu0 %v3382_v25 }
 0x526   : > { %3110 = vmatpush3.bf16.msra.mxu1 %v3355_v24 }
 0x527   : > { %3111 = vmatprep.subr.bf16.mxu1 %v3356_v28 }
 0x52a   : > { %3112 = vmatpush3.bf16.msra.mxu1 %v3356_v28 }
 0x52b   : > { %1566 = vmatmul.mubr.bf16.gmra.mrb[100].mxu0 %v3383_v2  ;;  %3113 = vmatprep.subr.bf16.mxu1 %v3357_v29 }
 0x52c   : > { %1573 = vmatprep.mubr.bf16.mxu0 %v3384_v47 }
 0x52e   : > { %3114 = vmatpush3.bf16.msra.mxu1 %v3357_v29 }
 0x533   : > { %1574 = vmatmul.mubr.bf16.gmra.mrb[104].mxu0 %v3385_v50 }
 0x534   : > { %1581 = vmatprep.mubr.bf16.mxu0 %v3386_v56 }
 0x53b   : > { %1582 = vmatmul.mubr.bf16.gmra.mrb[108].mxu0 %v3387_v57 }
 0x53c   : > { %1589 = vmatprep.mubr.bf16.mxu0 %v3388_v3 }
 0x543   : > { %1590 = vmatmul.mubr.bf16.gmra.mrb[112].mxu0 %v3389_v58 }
 0x544   : > { %1597 = vmatprep.mubr.bf16.mxu0 %v3390_v59 }
 0x54b   : > { %1598 = vmatmul.mubr.bf16.gmra.mrb[116].mxu0 %v3391_v60 }
 0x54c   : > { %1605 = vmatprep.mubr.bf16.mxu0 %v3392_v62 }
 0x553   : > { %1606 = vmatmul.mubr.bf16.gmra.mrb[120].mxu0 %v3393_v63 }
 0x554   : > { %1613 = vmatprep.mubr.bf16.mxu0 %v3394_v4 }
 0x55b   : > { %1614 = vmatmul.mubr.bf16.gmra.mrb[124].mxu0 %v3395_v5 }
 0x55c   : > { %1621 = vmatprep.mubr.bf16.mxu0 %v3396_v23 }
 0x563   : > { %1622 = vmatmul.mubr.bf16.gmra.mrb[128].mxu0 %v3397_v6 }
 0x564   : > { %1629 = vmatprep.mubr.bf16.mxu0 %v3398_v22 }
 0x56b   : > { %1630 = vmatmul.mubr.bf16.gmra.mrb[132].mxu0 %v3399_v46 }
 0x56c   : > { %1637 = vmatprep.mubr.bf16.mxu0 %v3400_v43 }
 0x573   : > { %1638 = vmatmul.mubr.bf16.gmra.mrb[136].mxu0 %v3401_v8 }
 0x574   : > { %1645 = vmatprep.mubr.bf16.mxu0 %v3402_v17 }
 0x57b   : > { %1646 = vmatmul.mubr.bf16.gmra.mrb[140].mxu0 %v3403_v26 }
 0x57c   : > { %1653 = vmatprep.mubr.bf16.mxu0 %v3404_v27 }
 0x583   : > { %1654 = vmatmul.mubr.bf16.gmra.mrb[144].mxu0 %v3405_v30 }
 0x584   : > { %1661 = vmatprep.mubr.bf16.mxu0 %v3406_v31 }
 0x58b   : > { %1662 = vmatmul.mubr.bf16.gmra.mrb[148].mxu0 %v3407_v32 }
 0x58c   : > { %1669 = vmatprep.mubr.bf16.mxu0 %v3408_v20 }
 0x593   : > { %1670 = vmatmul.mubr.bf16.gmra.mrb[152].mxu0 %v3409_v19 }
 0x594   : > { %1677 = vmatprep.mubr.bf16.mxu0 %v3410_v33 }
 0x59b   : > { %1678 = vmatmul.mubr.bf16.gmra.mrb[156].mxu0 %v3411_v34 }
 0x5f6   : > { %v2835_v35 = vpop.f32.mrb[96].mxu0 }
 0x5f7   : > { %v2836_v36 = vpop.f32.mrb[97].mxu0 }
 0x5f8   : > { %v2837_v39 = vadd.f32 %v2836_v36, %v2835_v35  ;;  %v2838_v40 = vpop.f32.mrb[98].mxu0 }
 0x5f9   : > { %v2839_v41 = vpop.f32.mrb[99].mxu0 }
 0x5fa   : > { %v2840_v42 = vadd.f32 %v2839_v41, %v2838_v40 }
 0x5fc   : > { %v1686_v44 = vpack.c.bf16 %v2840_v42, %v2837_v39 }
 0x5fe   : > { %v2841_v45 = vpop.f32.mrb[100].mxu0  ;;  %3115 = vmatprep.mubr.bf16.mxu1 %v1686_v44 }
 0x5ff   : > { %v2842_v48 = vpop.f32.mrb[101].mxu0 }
 0x600   : > { %v2843_v38 = vadd.f32 %v2842_v48, %v2841_v45  ;;  %v2844_v49 = vpop.f32.mrb[102].mxu0 }
 0x601   : > { %v2845_v37 = vpop.f32.mrb[103].mxu0 }
 0x602   : > { %v2846_v51 = vadd.f32 %v2845_v37, %v2844_v49 }
 0x604   : > { %v1687_v52 = vpack.c.bf16 %v2846_v51, %v2843_v38 }
 0x606   : > { %v2847_v53 = vpop.f32.mrb[104].mxu0  ;;  %3116 = vmatmul.mubr.bf16.vlgmr.msra.gmra.mrb[96].mxu1 %v1687_v52 }
 0x607   : > { %v2848_v54 = vpop.f32.mrb[105].mxu0 }
 0x608   : > { %v2849_v1 = vadd.f32 %v2848_v54, %v2847_v53  ;;  %v2850_v7 = vpop.f32.mrb[106].mxu0 }
 0x609   : > { %v2851_v9 = vpop.f32.mrb[107].mxu0 }
 0x60a   : > { %v2852_v10 = vadd.f32 %v2851_v9, %v2850_v7 }
 0x60c   : > { %v1688_v12 = vpack.c.bf16 %v2852_v10, %v2849_v1 }
 0x60e   : > { %v2853_v13 = vpop.f32.mrb[108].mxu0  ;;  %3119 = vmatprep.mubr.bf16.mxu1 %v1688_v12 }
 0x60f   : > { %v2854_v14 = vpop.f32.mrb[109].mxu0 }
 0x610   : > { %v2855_v0 = vadd.f32 %v2854_v14, %v2853_v13  ;;  %v2856_v15 = vpop.f32.mrb[110].mxu0 }
 0x611   : > { %v2857_v55 = vpop.f32.mrb[111].mxu0 }
 0x612   : > { %v2858_v16 = vadd.f32 %v2857_v55, %v2856_v15 }
 0x614   : > { %v1689_v21 = vpack.c.bf16 %v2858_v16, %v2855_v0 }
 0x616   : > { %v2859_v61 = vpop.f32.mrb[112].mxu0  ;;  %3120 = vmatmul.mubr.bf16.gmra.mrb[100].mxu1 %v1689_v21 }
 0x617   : > { %v2860_v11 = vpop.f32.mrb[113].mxu0 }
 0x618   : > { %v2861_v25 = vadd.f32 %v2860_v11, %v2859_v61  ;;  %v2862_v2 = vpop.f32.mrb[114].mxu0 }
 0x619   : > { %v2863_v47 = vpop.f32.mrb[115].mxu0 }
 0x61a   : > { %v2864_v50 = vadd.f32 %v2863_v47, %v2862_v2 }
 0x61c   : > { %v1690_v56 = vpack.c.bf16 %v2864_v50, %v2861_v25 }
 0x61e   : > { %v2865_v57 = vpop.f32.mrb[116].mxu0  ;;  %3123 = vmatprep.mubr.bf16.mxu1 %v1690_v56 }
 0x61f   : > { %v2866_v3 = vpop.f32.mrb[117].mxu0 }
 0x620   : > { %v2867_v58 = vadd.f32 %v2866_v3, %v2865_v57  ;;  %v2868_v59 = vpop.f32.mrb[118].mxu0 }
 0x621   : > { %v2869_v60 = vpop.f32.mrb[119].mxu0 }
 0x622   : > { %v2870_v62 = vadd.f32 %v2869_v60, %v2868_v59 }
 0x624   : > { %v1691_v63 = vpack.c.bf16 %v2870_v62, %v2867_v58 }
 0x626   : > { %v2871_v4 = vpop.f32.mrb[120].mxu0  ;;  %3124 = vmatmul.mubr.bf16.gmra.mrb[104].mxu1 %v1691_v63 }
 0x627   : > { %v2872_v5 = vpop.f32.mrb[121].mxu0 }
 0x628   : > { %v2873_v23 = vadd.f32 %v2872_v5, %v2871_v4  ;;  %v2874_v6 = vpop.f32.mrb[122].mxu0 }
 0x629   : > { %v2875_v22 = vpop.f32.mrb[123].mxu0 }
 0x62a   : > { %v2876_v46 = vadd.f32 %v2875_v22, %v2874_v6 }
 0x62c   : > { %v1692_v43 = vpack.c.bf16 %v2876_v46, %v2873_v23 }
 0x62e   : > { %v2877_v8 = vpop.f32.mrb[124].mxu0  ;;  %3127 = vmatprep.mubr.bf16.mxu1 %v1692_v43  ;;  %v4109_v43 = vld [vmem:[%s4219_s4 + $0x2] ss:$0 sm:$0xff] }
 0x62f   : > { %v2878_v17 = vpop.f32.mrb[125].mxu0 }
 0x630   : > { %v2879_v18 = vadd.f32 %v2878_v17, %v2877_v8  ;;  %v2880_v24 = vpop.f32.mrb[126].mxu0  ;;  %v3360_v8 = vld [vmem:[#allocation5 + $0x4] ss:$8 sps:$4 sm:$0xff]  }
 0x631   : > { %v2881_v26 = vpop.f32.mrb[127].mxu0 }
 0x632   : > { %v2882_v27 = vadd.f32 %v2881_v26, %v2880_v24 }
 0x634   : > { %v1693_v28 = vpack.c.bf16 %v2882_v27, %v2879_v18 }
 0x636   : > { %v2883_v29 = vpop.f32.mrb[128].mxu0  ;;  %3128 = vmatmul.mubr.bf16.gmra.mrb[108].mxu1 %v1693_v28 }
 0x637   : > { %v2884_v30 = vpop.f32.mrb[129].mxu0 }
 0x638   : > { %v2885_v31 = vadd.f32 %v2884_v30, %v2883_v29  ;;  %v2886_v32 = vpop.f32.mrb[130].mxu0 }
 0x639   : > { %v2887_v20 = vpop.f32.mrb[131].mxu0 }
 0x63a   : > { %v2888_v19 = vadd.f32 %v2887_v20, %v2886_v32 }
 0x63c   : > { %v1694_v33 = vpack.c.bf16 %v2888_v19, %v2885_v31 }
 0x63e   : > { %v2889_v34 = vpop.f32.mrb[132].mxu0  ;;  %3131 = vmatprep.mubr.bf16.mxu1 %v1694_v33 }
 0x63f   : > { %v2890_v35 = vpop.f32.mrb[133].mxu0 }
 0x640   : > { %v2891_v36 = vadd.f32 %v2890_v35, %v2889_v34  ;;  %v2892_v39 = vpop.f32.mrb[134].mxu0 }
 0x641   : > { %v2893_v40 = vpop.f32.mrb[135].mxu0 }
 0x642   : > { %v2894_v41 = vadd.f32 %v2893_v40, %v2892_v39 }
 0x644   : > { %v1695_v42 = vpack.c.bf16 %v2894_v41, %v2891_v36 }
 0x646   : > { %v2895_v44 = vpop.f32.mrb[136].mxu0  ;;  %3132 = vmatmul.mubr.bf16.gmra.mrb[112].mxu1 %v1695_v42 }
 0x647   : > { %v2896_v45 = vpop.f32.mrb[137].mxu0 }
 0x648   : > { %v2897_v48 = vadd.f32 %v2896_v45, %v2895_v44  ;;  %v2898_v38 = vpop.f32.mrb[138].mxu0 }
 0x649   : > { %v2899_v49 = vpop.f32.mrb[139].mxu0 }
 0x64a   : > { %v2900_v37 = vadd.f32 %v2899_v49, %v2898_v38 }
 0x64c   : > { %v1696_v51 = vpack.c.bf16 %v2900_v37, %v2897_v48 }
 0x64e   : > { %v2901_v52 = vpop.f32.mrb[140].mxu0  ;;  %3135 = vmatprep.mubr.bf16.mxu1 %v1696_v51 }
 0x64f   : > { %v2902_v53 = vpop.f32.mrb[141].mxu0 }
 0x650   : > { %v2903_v54 = vadd.f32 %v2902_v53, %v2901_v52  ;;  %v2904_v1 = vpop.f32.mrb[142].mxu0 }
 0x651   : > { %v2905_v7 = vpop.f32.mrb[143].mxu0 }
 0x652   : > { %v2906_v9 = vadd.f32 %v2905_v7, %v2904_v1 }
 0x654   : > { %v1697_v10 = vpack.c.bf16 %v2906_v9, %v2903_v54 }
 0x656   : > { %v2907_v12 = vpop.f32.mrb[144].mxu0  ;;  %3136 = vmatmul.mubr.bf16.gmra.mrb[116].mxu1 %v1697_v10 }
 0x657   : > { %v2908_v13 = vpop.f32.mrb[145].mxu0 }
 0x658   : > { %v2909_v14 = vadd.f32 %v2908_v13, %v2907_v12  ;;  %v2910_v0 = vpop.f32.mrb[146].mxu0 }
 0x659   : > { %v2911_v15 = vpop.f32.mrb[147].mxu0 }
 0x65a   : > { %v2912_v55 = vadd.f32 %v2911_v15, %v2910_v0 }
 0x65c   : > { %v1698_v16 = vpack.c.bf16 %v2912_v55, %v2909_v14 }
 0x65e   : > { %v2913_v21 = vpop.f32.mrb[148].mxu0  ;;  %3139 = vmatprep.mubr.bf16.mxu1 %v1698_v16 }
 0x65f   : > { %v2914_v61 = vpop.f32.mrb[149].mxu0 }
 0x660   : > { %v2915_v11 = vadd.f32 %v2914_v61, %v2913_v21  ;;  %v2916_v25 = vpop.f32.mrb[150].mxu0 }
 0x661   : > { %v2917_v2 = vpop.f32.mrb[151].mxu0 }
 0x662   : > { %v2918_v47 = vadd.f32 %v2917_v2, %v2916_v25 }
 0x664   : > { %v1699_v50 = vpack.c.bf16 %v2918_v47, %v2915_v11 }
 0x666   : > { %v2919_v56 = vpop.f32.mrb[152].mxu0  ;;  %3140 = vmatmul.mubr.bf16.gmra.mrb[120].mxu1 %v1699_v50 }
 0x667   : > { %v2920_v57 = vpop.f32.mrb[153].mxu0 }
 0x668   : > { %v2921_v3 = vadd.f32 %v2920_v57, %v2919_v56  ;;  %v2922_v58 = vpop.f32.mrb[154].mxu0 }
 0x669   : > { %v2923_v59 = vpop.f32.mrb[155].mxu0 }
 0x66a   : > { %v2924_v60 = vadd.f32 %v2923_v59, %v2922_v58 }
 0x66c   : > { %v1700_v62 = vpack.c.bf16 %v2924_v60, %v2921_v3 }
 0x66e   : > { %v2925_v63 = vpop.f32.mrb[156].mxu0  ;;  %3143 = vmatprep.mubr.bf16.mxu1 %v1700_v62 }
 0x66f   : > { %v2926_v4 = vpop.f32.mrb[157].mxu0 }
 0x670   : > { %v2927_v5 = vadd.f32 %v2926_v4, %v2925_v63  ;;  %v2928_v23 = vpop.f32.mrb[158].mxu0 }
 0x671   : > { %v2929_v6 = vpop.f32.mrb[159].mxu0 }
 0x672   : > { %v2930_v22 = vadd.f32 %v2929_v6, %v2928_v23 }
 0x674   : > { %v1701_v46 = vpack.c.bf16 %v2930_v22, %v2927_v5 }
 0x676   : > { %3144 = vmatmul.mubr.bf16.gmra.mrb[124].mxu1 %v1701_v46 }
 0x677   : > { %2036 = vmatprep.mubr.bf16.mxu1 %v3360_v8 }
 0x6d9   : > { %v3117_v17 = vpop.f32.mrb[96].mxu1 }
 0x6da   : > { %v1818_v18 = vadd.f32 %v3117_v17, %v4109_v43  ;;  %v1809_v24 = vpop.f32.mrb[97].mxu1 }
 0x6db   : > { %v1810_v26 = vadd.f32 %v4109_v43, %v1809_v24  ;;  %v3118_v27 = vpop.f32.mrb[98].mxu1 }
 0x6dc   : > { %v1821_v28 = vadd.f32 %v3118_v27, %v4109_v43  ;;  %v1812_v29 = vpop.f32.mrb[99].mxu1  ;;  %v1938_v31 = vmax.f32 %v1818_v18, 0.0 }
 0x6dd   : > { %v1813_v30 = vadd.f32 %v4109_v43, %v1812_v29  ;;  %v1936_v20 = vmax.f32 %v1810_v26, 0.0 }
 0x6de   : > { %v1939_v32 = vmax.f32 %v1821_v28, 0.0 }
 0x6df   : > { %v1937_v19 = vmax.f32 %v1813_v30, 0.0 }
 0x6e0   : > { %v1969_v33 = vpack.c.bf16 %v1939_v32, %v1938_v31 }
 0x6e1   : > { %v1968_v34 = vpack.c.bf16 %v1937_v19, %v1936_v20 }
 0x6e9   : > { %v3121_v35 = vpop.f32.mrb[100].mxu1 }
 0x6ea   : > { %v1834_v36 = vadd.f32 %v3121_v35, %v4109_v43  ;;  %v1825_v39 = vpop.f32.mrb[101].mxu1 }
 0x6eb   : > { %v1826_v40 = vadd.f32 %v4109_v43, %v1825_v39  ;;  %v3122_v41 = vpop.f32.mrb[102].mxu1 }
 0x6ec   : > { %v1837_v42 = vadd.f32 %v3122_v41, %v4109_v43  ;;  %v1828_v44 = vpop.f32.mrb[103].mxu1  ;;  %v1942_v48 = vmax.f32 %v1834_v36, 0.0 }
 0x6ed   : > { %v1829_v45 = vadd.f32 %v4109_v43, %v1828_v44  ;;  %v1940_v49 = vmax.f32 %v1826_v40, 0.0 }
 0x6ee   : > { %v1943_v38 = vmax.f32 %v1837_v42, 0.0 }
 0x6ef   : > { %v1941_v37 = vmax.f32 %v1829_v45, 0.0 }
 0x6f0   : > { %v4119_v51 = vpack.c.bf16 %v1943_v38, %v1942_v48 }
 0x6f1   : > { %v1970_v52 = vpack.c.bf16 %v1941_v37, %v1940_v49 }
 0x6f9   : > { %v3125_v53 = vpop.f32.mrb[104].mxu1 }
 0x6fa   : > { %v1850_v54 = vadd.f32 %v3125_v53, %v4109_v43  ;;  %v1841_v1 = vpop.f32.mrb[105].mxu1 }
 0x6fb   : > { %v1842_v7 = vadd.f32 %v4109_v43, %v1841_v1  ;;  %v3126_v9 = vpop.f32.mrb[106].mxu1 }
 0x6fc   : > { %v1853_v10 = vadd.f32 %v3126_v9, %v4109_v43  ;;  %v1844_v12 = vpop.f32.mrb[107].mxu1  ;;  %v1946_v14 = vmax.f32 %v1850_v54, 0.0 }
 0x6fd   : > { %v1845_v13 = vadd.f32 %v4109_v43, %v1844_v12  ;;  %v1944_v15 = vmax.f32 %v1842_v7, 0.0 }
 0x6fe   : > { %v1947_v0 = vmax.f32 %v1853_v10, 0.0 }
 0x6ff   : > { %v1945_v55 = vmax.f32 %v1845_v13, 0.0 }
 0x700   : > { %v4125_v16 = vpack.c.bf16 %v1947_v0, %v1946_v14 }
 0x701   : > { %v4127_v21 = vpack.c.bf16 %v1945_v55, %v1944_v15 }
 0x709   : > { %v3129_v61 = vpop.f32.mrb[108].mxu1 }
 0x70a   : > { %v1866_v11 = vadd.f32 %v3129_v61, %v4109_v43  ;;  %v1857_v25 = vpop.f32.mrb[109].mxu1 }
 0x70b   : > { %v1858_v2 = vadd.f32 %v4109_v43, %v1857_v25  ;;  %v3130_v47 = vpop.f32.mrb[110].mxu1 }
 0x70c   : > { %v1869_v50 = vadd.f32 %v3130_v47, %v4109_v43  ;;  %v1860_v56 = vpop.f32.mrb[111].mxu1  ;;  %v1950_v3 = vmax.f32 %v1866_v11, 0.0 }
 0x70d   : > { %v1861_v57 = vadd.f32 %v4109_v43, %v1860_v56  ;;  %v1948_v59 = vmax.f32 %v1858_v2, 0.0 }
 0x70e   : > { %v1951_v58 = vmax.f32 %v1869_v50, 0.0 }
 0x70f   : > { %v1949_v60 = vmax.f32 %v1861_v57, 0.0 }
 0x710   : > { %v4133_v62 = vpack.c.bf16 %v1951_v58, %v1950_v3  ;;  %v3358_v3 = vld [vmem:[#allocation5] ss:$8 sps:$4 sm:$0xff]   ;;  %v3361_v58 = vld [vmem:[#allocation5 + $0x14] ss:$8 sps:$4 sm:$0xff]  }
 0x711   : > { %v4135_v63 = vpack.c.bf16 %v1949_v60, %v1948_v59  ;;  %v3365_v59 = vld [vmem:[#allocation8 + $0xc8] sm:$0xff]   ;;  %v3363_v60 = vld [vmem:[#allocation5 + $0x10] ss:$8 sps:$4 sm:$0xff]  }
 0x719   : > { %v3133_v4 = vpop.f32.mrb[112].mxu1 }
 0x71a   : > { %v1882_v5 = vadd.f32 %v3133_v4, %v4109_v43  ;;  %v1873_v23 = vpop.f32.mrb[113].mxu1  ;;  %v3367_v4 = vld [vmem:[#allocation8 + $0xd8] sm:$0xff]  }
 0x71b   : > { %v1874_v6 = vadd.f32 %v4109_v43, %v1873_v23  ;;  %v3134_v22 = vpop.f32.mrb[114].mxu1  ;;  %v3371_v23 = vld [vmem:[#allocation8 + $0xf8] sm:$0xff]  }
 0x71c   : > { %v1885_v46 = vadd.f32 %v3134_v22, %v4109_v43  ;;  %v1876_v8 = vpop.f32.mrb[115].mxu1  ;;  %v1954_v18 = vmax.f32 %v1882_v5, 0.0  ;;  %v3370_v5 = vld [vmem:[#allocation8 + $0xf0] sm:$0xff]   ;;  %v3373_v22 = vld [vmem:[#allocation8 + $0x108] sm:$0xff]  }
 0x71d   : > { %v1877_v17 = vadd.f32 %v4109_v43, %v1876_v8  ;;  %v1952_v26 = vmax.f32 %v1874_v6, 0.0  ;;  %v3372_v6 = vld [vmem:[#allocation8 + $0x100] sm:$0xff]   ;;  %v3375_v8 = vld [vmem:[#allocation8 + $0x118] sm:$0xff]  }
 0x71e   : > { %v1955_v24 = vmax.f32 %v1885_v46, 0.0  ;;  %3167 = vmatprep.subr.bf16.mxu0 %v3372_v6  ;;  %v3374_v46 = vld [vmem:[#allocation8 + $0x110] sm:$0xff]  }
 0x71f   : > { %v1953_v27 = vmax.f32 %v1877_v17, 0.0  ;;  %3168 = vmatpush3.bf16.msra.mxu0 %v3372_v6  ;;  %v3376_v17 = vld [vmem:[#allocation8 + $0x120] sm:$0xff]  }
 0x720   : > { %v1977_v28 = vpack.c.bf16 %v1955_v24, %v1954_v18  ;;  %3169 = vmatprep.subr.bf16.mxu0 %v3373_v22  ;;  %v3377_v18 = vld [vmem:[#allocation8 + $0x128] sm:$0xff]   ;;  %v3378_v24 = vld [vmem:[#allocation8 + $0x130] sm:$0xff]  }
 0x721   : > { %v1976_v29 = vpack.c.bf16 %v1953_v27, %v1952_v26 }
 0x723   : > { %2955 = vmatprep.subr.bf16.mxu1 %v1976_v29  ;;  %3170 = vmatpush3.bf16.msra.mxu0 %v3373_v22 }
 0x724   : > { %2956 = vmatpush3.bf16.msra.mxu1 %v1968_v34  ;;  %3171 = vmatprep.subr.bf16.mxu0 %v3374_v46 }
 0x725   : > { %2957 = vmatprep.subr.bf16.mxu1 %v1977_v28 }
 0x727   : > { %3172 = vmatpush3.bf16.msra.mxu0 %v3374_v46 }
 0x728   : > { %2958 = vmatpush3.bf16.msra.mxu1 %v1969_v33  ;;  %3173 = vmatprep.subr.bf16.mxu0 %v3375_v8 }
 0x729   : > { %v3137_v30 = vpop.f32.mrb[116].mxu1 }
 0x72a   : > { %v1898_v31 = vadd.f32 %v3137_v30, %v4109_v43  ;;  %v1889_v32 = vpop.f32.mrb[117].mxu1 }
 0x72b   : > { %v1890_v20 = vadd.f32 %v4109_v43, %v1889_v32  ;;  %v3138_v19 = vpop.f32.mrb[118].mxu1  ;;  %3174 = vmatpush3.bf16.msra.mxu0 %v3375_v8 }
 0x72c   : > { %v1901_v35 = vadd.f32 %v3138_v19, %v4109_v43  ;;  %v1892_v36 = vpop.f32.mrb[119].mxu1  ;;  %v1958_v40 = vmax.f32 %v1898_v31, 0.0  ;;  %3175 = vmatprep.subr.bf16.mxu0 %v3376_v17 }
 0x72d   : > { %v1893_v39 = vadd.f32 %v4109_v43, %v1892_v36  ;;  %v1956_v42 = vmax.f32 %v1890_v20, 0.0 }
 0x72e   : > { %v1959_v41 = vmax.f32 %v1901_v35, 0.0 }
 0x72f   : > { %v1957_v44 = vmax.f32 %v1893_v39, 0.0  ;;  %3176 = vmatpush3.bf16.msra.mxu0 %v3376_v17 }
 0x730   : > { %v1979_v45 = vpack.c.bf16 %v1959_v41, %v1958_v40  ;;  %3177 = vmatprep.subr.bf16.mxu0 %v3377_v18 }
 0x731   : > { %v1978_v34 = vpack.c.bf16 %v1957_v44, %v1956_v42  ;;  %v3379_v42 = vld [vmem:[#allocation8 + $0x138] sm:$0xff]   ;;  %v2521_v44 = vld [vmem:[%s4219_s4 + $0x3] ss:$0 sm:$0xff] }
 0x733   : > { %2959 = vmatprep.subr.bf16.mxu1 %v1978_v34  ;;  %3178 = vmatpush3.bf16.msra.mxu0 %v3377_v18 }
 0x734   : > { %2960 = vmatpush3.bf16.msra.mxu1 %v1970_v52  ;;  %3179 = vmatprep.subr.bf16.mxu0 %v3378_v24 }
 0x735   : > { %2961 = vmatprep.subr.bf16.mxu1 %v1979_v45 }
 0x737   : > { %3180 = vmatpush3.bf16.msra.mxu0 %v3378_v24 }
 0x738   : > { %2962 = vmatpush3.bf16.msra.mxu1 %v4119_v51  ;;  %3181 = vmatprep.subr.bf16.mxu0 %v3379_v42 }
 0x739   : > { %v3141_v33 = vpop.f32.mrb[120].mxu1 }
 0x73a   : > { %v1914_v48 = vadd.f32 %v3141_v33, %v4109_v43  ;;  %v1905_v38 = vpop.f32.mrb[121].mxu1 }
 0x73b   : > { %v1906_v49 = vadd.f32 %v4109_v43, %v1905_v38  ;;  %v3142_v37 = vpop.f32.mrb[122].mxu1  ;;  %3182 = vmatpush3.bf16.msra.mxu0 %v3379_v42 }
 0x73c   : > { %v1917_v53 = vadd.f32 %v3142_v37, %v4109_v43  ;;  %v1908_v54 = vpop.f32.mrb[123].mxu1  ;;  %v1962_v7 = vmax.f32 %v1914_v48, 0.0 }
 0x73d   : > { %v1909_v1 = vadd.f32 %v4109_v43, %v1908_v54  ;;  %v1960_v10 = vmax.f32 %v1906_v49, 0.0 }
 0x73e   : > { %v1963_v9 = vmax.f32 %v1917_v53, 0.0 }
 0x73f   : > { %v1961_v12 = vmax.f32 %v1909_v1, 0.0 }
 0x740   : > { %v1981_v52 = vpack.c.bf16 %v1963_v9, %v1962_v7 }
 0x741   : > { %v1980_v13 = vpack.c.bf16 %v1961_v12, %v1960_v10 }
 0x743   : > { %2963 = vmatprep.subr.bf16.mxu1 %v1980_v13 }
 0x744   : > { %2964 = vmatpush3.bf16.msra.mxu1 %v4127_v21 }
 0x745   : > { %2965 = vmatprep.subr.bf16.mxu1 %v1981_v52  ;;  %v2531_v52 = vld [vmem:[%s4219_s4 + $0x4] ss:$0 sm:$0xff] }
 0x748   : > { %2966 = vmatpush3.bf16.msra.mxu1 %v4125_v16  ;;  %v3364_v16 = vld [vmem:[#allocation8 + $0xc0] sm:$0xff]  }
 0x749   : > { %v3145_v51 = vpop.f32.mrb[124].mxu1 }
 0x74a   : > { %v1930_v14 = vadd.f32 %v3145_v51, %v4109_v43  ;;  %v1921_v0 = vpop.f32.mrb[125].mxu1 }
 0x74b   : > { %v1922_v15 = vadd.f32 %v4109_v43, %v1921_v0  ;;  %v3146_v55 = vpop.f32.mrb[126].mxu1 }
 0x74c   : > { %v1933_v61 = vadd.f32 %v3146_v55, %v4109_v43  ;;  %v1924_v11 = vpop.f32.mrb[127].mxu1  ;;  %v1966_v2 = vmax.f32 %v1930_v14, 0.0 }
 0x74d   : > { %v1925_v25 = vadd.f32 %v4109_v43, %v1924_v11  ;;  %v1964_v50 = vmax.f32 %v1922_v15, 0.0  ;;  %v3366_v43 = vld [vmem:[#allocation8 + $0xd0] sm:$0xff]  }
 0x74e   : > { %v1967_v47 = vmax.f32 %v1933_v61, 0.0 }
 0x74f   : > { %v1965_v56 = vmax.f32 %v1925_v25, 0.0 }
 0x750   : > { %v1983_v21 = vpack.c.bf16 %v1967_v47, %v1966_v2 }
 0x751   : > { %v1982_v57 = vpack.c.bf16 %v1965_v56, %v1964_v50 }
 0x753   : > { %2967 = vmatprep.subr.bf16.mxu1 %v1982_v57 }
 0x754   : > { %2968 = vmatpush3.bf16.msra.mxu1 %v4135_v63  ;;  %v3368_v63 = vld [vmem:[#allocation8 + $0xe0] sm:$0xff]  }
 0x755   : > { %2969 = vmatprep.subr.bf16.mxu1 %v1983_v21 }
 0x758   : > { %2970 = vmatpush3.bf16.msra.mxu1 %v4133_v62  ;;  %v3369_v62 = vld [vmem:[#allocation8 + $0xe8] sm:$0xff]  }
 0x759   : > { %3147 = vmatprep.subr.bf16.mxu1 %v3364_v16 }
 0x75b   : > { %2037 = vmatmul.mubr.bf16.vlgmr.msra.gmra.mrb[128].mxu1 %v3358_v3 }
 0x75c   : > { %2044 = vmatprep.mubr.bf16.mxu1 %v3361_v58  ;;  %3148 = vmatpush3.bf16.msra.mxu1 %v3364_v16 }
 0x75d   : > { %3149 = vmatprep.subr.bf16.mxu1 %v3365_v59 }
 0x760   : > { %3150 = vmatpush3.bf16.msra.mxu1 %v3365_v59 }
 0x761   : > { %3151 = vmatprep.subr.bf16.mxu1 %v3366_v43 }
 0x763   : > { %2045 = vmatmul.mubr.bf16.gmra.mrb[132].mxu1 %v3363_v60 }
 0x764   : > { %3152 = vmatpush3.bf16.msra.mxu1 %v3366_v43 }
 0x765   : > { %3153 = vmatprep.subr.bf16.mxu1 %v3367_v4 }
 0x768   : > { %3154 = vmatpush3.bf16.msra.mxu1 %v3367_v4 }
 0x769   : > { %3155 = vmatprep.subr.bf16.mxu1 %v3368_v63 }
 0x76c   : > { %3156 = vmatpush3.bf16.msra.mxu1 %v3368_v63 }
 0x76d   : > { %3157 = vmatprep.subr.bf16.mxu1 %v3369_v62 }
 0x770   : > { %3158 = vmatpush3.bf16.msra.mxu1 %v3369_v62 }
 0x771   : > { %3159 = vmatprep.subr.bf16.mxu1 %v3370_v5 }
 0x774   : > { %3160 = vmatpush3.bf16.msra.mxu1 %v3370_v5 }
 0x775   : > { %3161 = vmatprep.subr.bf16.mxu1 %v3371_v23 }
 0x778   : > { %3162 = vmatpush3.bf16.msra.mxu1 %v3371_v23 }
 0x82e   : > { %v2971_v26 = vpop.f32.mrb[128].mxu1 }
 0x82f   : > { %v2972_v27 = vpop.f32.mrb[129].mxu1 }
 0x830   : > { %v2973_v28 = vadd.f32 %v2972_v27, %v2971_v26  ;;  %v2974_v29 = vpop.f32.mrb[130].mxu1 }
 0x831   : > { %v2975_v30 = vpop.f32.mrb[131].mxu1 }
 0x832   : > { %v2976_v31 = vadd.f32 %v2975_v30, %v2974_v29 }
 0x834   : > { %v2053_v32 = vpack.c.bf16 %v2976_v31, %v2973_v28 }
 0x836   : > { %v2977_v20 = vpop.f32.mrb[132].mxu1  ;;  %3163 = vmatprep.mubr.bf16.mxu1 %v2053_v32 }
 0x837   : > { %v2978_v19 = vpop.f32.mrb[133].mxu1 }
 0x838   : > { %v2979_v35 = vadd.f32 %v2978_v19, %v2977_v20  ;;  %v2980_v36 = vpop.f32.mrb[134].mxu1 }
 0x839   : > { %v2981_v39 = vpop.f32.mrb[135].mxu1 }
 0x83a   : > { %v2982_v40 = vadd.f32 %v2981_v39, %v2980_v36 }
 0x83c   : > { %v2054_v41 = vpack.c.bf16 %v2982_v40, %v2979_v35 }
 0x83e   : > { %3164 = vmatmul.mubr.bf16.vlgmr.msra.gmra.mrb[136].mxu1 %v2054_v41 }
 0x911   : > { %v3165_v45 = vpop.f32.mrb[136].mxu1 }
 0x912   : > { %v2171_v34 = vadd.f32 %v3165_v45, %v2521_v44  ;;  %v2162_v33 = vpop.f32.mrb[137].mxu1 }
 0x913   : > { %v2163_v48 = vadd.f32 %v2521_v44, %v2162_v33  ;;  %v3166_v38 = vpop.f32.mrb[138].mxu1 }
 0x914   : > { %v2174_v49 = vadd.f32 %v3166_v38, %v2521_v44  ;;  %v2165_v37 = vpop.f32.mrb[139].mxu1  ;;  %v2179_v54 = vmax.f32 %v2171_v34, 0.0 }
 0x915   : > { %v2166_v53 = vadd.f32 %v2521_v44, %v2165_v37  ;;  %v2177_v7 = vmax.f32 %v2163_v48, 0.0 }
 0x916   : > { %v2180_v1 = vmax.f32 %v2174_v49, 0.0 }
 0x917   : > { %v2178_v9 = vmax.f32 %v2166_v53, 0.0 }
 0x918   : > { %v2182_v10 = vpack.c.bf16 %v2180_v1, %v2179_v54 }
 0x919   : > { %v2181_v12 = vpack.c.bf16 %v2178_v9, %v2177_v7 }
 0x91b   : > { %3183 = vmatprep.mubr.bf16.mxu0 %v2181_v12 }
 0x91c   : > { %3184 = vmatmul.mubr.bf16.vlgmr.msra.gmra.mrb[160].mxu0 %v2182_v10 }
 0x9ef   : > { %v3185_v13 = vpop.f32.mrb[160].mxu0 }
 0x9f0   : > { %v2299_v51 = vadd.f32 %v3185_v13, %v2531_v52  ;;  %v2290_v14 = vpop.f32.mrb[161].mxu0 }
 0x9f1   : > { %v2291_v0 = vadd.f32 %v2531_v52, %v2290_v14  ;;  %v3186_v15 = vpop.f32.mrb[162].mxu0 }
 0x9f2   : > { %2307 = vst [vmem:[%s283_s15 + $0x10] sm:$0xff] %v2299_v51  ;;  %v2302_v55 = vadd.f32 %v3186_v15, %v2531_v52  ;;  %v2293_v61 = vpop.f32.mrb[163].mxu0 }
 0x9f3   : > { %2305 = vst [vmem:[%s283_s15] sm:$0xff] %v2291_v0  ;;  %v2294_v11 = vadd.f32 %v2531_v52, %v2293_v61 }
 0x9f4   : > { %2308 = vst [vmem:[%s283_s15 + $0x18] sm:$0xff] %v2302_v55 }
 0x9f5   : > { %2306 = vst [vmem:[%s283_s15 + $0x8] sm:$0xff] %v2294_v11 }
 0x9f6   : > { %3539 = shalt.err (!%p3536_p6)
}
 0x9f7   : > { %s3540_s28 = scalar_lea.hbm %s4171_s24, 512  ;;  %s3544_s23 = scalar_lea.hbm %s4220_s5, 1024 }
 0x9f8   : > { %p3541_p13 = scmp.ne.s32.totalorder %s4171_s24, %s3540_s28  ;;  %p3545_p8 = scmp.lt.u32.totalorder %s4171_s24, %s4220_s5 }
 0x9f9   : > { %p3546_p10 = scmp.lt.u32.totalorder %s3544_s23, %s3540_s28  ;;  %p3548_p0 = scmp.lt.u32.totalorder %s3540_s28, %s4171_s24 }
 0x9fa   : > { %p3542_p3 = pnand %p3541_p13, %p4251_p7 }
 0x9fb   : > { %p3547_p1 = por %p3546_p10, %p3545_p8 }
 0x9fc   : > { %p3543_p9 = pneg %p3542_p3 }
 0x9fd   : > { %p3549_p2 = por %p3548_p0, %p3547_p1 }
 0x9ff   : > { %p3550_p4 = pnand %p3549_p2, %p3543_p9 }
 0xa01   : > { %3553 = shalt.err (!%p3550_p4)
}
 0xa02   : > { %s3615_s17 = smov 128   ;;  %s3616_s13 = smov 8  }
 0xa03   : > { %3201 = dma.vmem_to_hbm [thread:$0]  (%p4251_p7), %s4166_s26, 512, %s4171_s24, %s2310_s22, %s3615_s17, %s3615_s17, %s3616_s13  }
 0xa04 PF: > { %s2338_s15 = sand.u32 1, %s3592_s18   ;;  %p4252_p11 = scmp.ne.s32.totalorder %s4234_s6, 0 }
 0xa05   : > { %p4253_p12 = scmp.ge.s32.totalorder %s3604_s21, 2  ;;  %s2339_s8 = scalar_lea.sflag [#allocation4], %s2338_s15 }
 0xa07   : > { %p3218_p5 = pnand %p4253_p12, %p4252_p11 }
 0xa09   : > { %3587 = dma.done.wait (!%p3218_p5), %s2339_s8, 512  }
 0xa0a   : > { %3589 = vsyncadd (!%p3218_p5), %s2339_s8, 4294966784  ;;  %s4254_s21 = sld [smem:[#allocation15_spill]]  ;;  %s4255_s16 = sld [smem:[#allocation16_spill]] }
 0xa0b   : > { %s4256_s18 = smov %s3596_s19  ;;  %s4257_s19 = smov %s3600_s20 }
 0xa10   : > { %p17_p6 = scmp.ge.s32.totalorder %s4254_s21, 4   ;;  %s4258_s20 = smov %s4255_s16 }
 0xa12   :  { %19 = sbr.rel (!%p17_p6) target bundleno = 7 (0x7), region = 104 }
 0xa19   :  { %2344 = vsyncpa [#allocation3], 1 }
 0xa1a   :  { %2346 = vsyncpa [#allocation3 + $0x1], 1 }
 0xa1b   :  { %2347 = vsyncpa [#allocation6], 1 }
 0xa1c   :  { %2348 = vsyncpa [#allocation4], 1 }
 0xa1d   :  { %2350 = vsyncpa [#allocation4 + $0x1], 1 }

</bundles_post_ra>
